<compile_context>
chip_gen: v5e
topology: v5e:2x2
jax: 0.10.0
libtpu: 0.0.40
codegen_flags: <defaults>
</compile_context>

<pallas_src>
import jax
import jax.numpy as jnp
from jax import lax
from jax.experimental import pallas as pl
from jax.experimental.pallas import tpu as pltpu

# ----- small synthetic CLIP-text config ------------------------------------
B = 2            # batch (number of prompts)
L = 8            # context_length
D = 32           # transformer width
H = 4            # attention heads
HD = D // H      # head dim
MLP = 4 * D      # MLP hidden
LAYERS = 2       # transformer depth
E = 16           # text_projection output dim (embed dim)
LN_EPS = 1e-5


def _layernorm(x, w, b):
    """f32 LayerNorm over last dim; w/b are (1, D)."""
    mu = jnp.mean(x, axis=-1, keepdims=True)
    var = jnp.mean((x - mu) ** 2, axis=-1, keepdims=True)
    return (x - mu) * lax.rsqrt(var + LN_EPS) * w + b


# ----- the single fused kernel ----------------------------------------------
def text_encoder_kernel(eot_ref,                     # scalar prefetch: (B,) int32 in SMEM
                        x_ref, pos_ref,              # (1,L,D) f32, (L,D) f32
                        wqkv_ref, bqkv_ref,          # (LAYERS,3,H,D,HD) bf16, (LAYERS,3,H,HD) f32
                        wo_ref, bo_ref,              # (LAYERS,H,HD,D) bf16, (LAYERS,1,D) f32
                        ln1w_ref, ln1b_ref, ln2w_ref, ln2b_ref,   # (LAYERS,1,D) f32
                        w1_ref, b1_ref,              # (LAYERS,D,MLP) bf16, (LAYERS,1,MLP) f32
                        w2_ref, b2_ref,              # (LAYERS,MLP,D) bf16, (LAYERS,1,D) f32
                        lnfw_ref, lnfb_ref,          # (1,D) f32
                        proj_ref,                    # (D,E) bf16
                        o_ref,                       # (1,1,E) f32
                        xbuf_ref):                   # VMEM scratch (L,D) f32
    b = pl.program_id(0)

    # fused: x = prompts + positional_embedding[:context_length]
    x = x_ref[0] + pos_ref[...]                      # (L, D) f32

    # layer-invariant causal additive bias, built once (finite, not -inf)
    r = lax.broadcasted_iota(jnp.int32, (L, L), 0)
    c = lax.broadcasted_iota(jnp.int32, (L, L), 1)
    causal_bias = jnp.where(c > r, jnp.float32(-1e30), jnp.float32(0.0))   # (L, L)

    for l in range(LAYERS):                          # static unroll; weights stay VMEM-resident
        # ----- multi-head self-attention (pre-LN) -----------------------------
        xn = _layernorm(x, ln1w_ref[l], ln1b_ref[l])                       # (L, D) f32
        xb = jnp.broadcast_to(xn.astype(jnp.bfloat16)[None], (H, L, D))    # head-batched operand

        # head-major projections (weights repacked host-side; Q scale pre-folded)
        q = jnp.einsum('hld,hde->hle', xb, wqkv_ref[l, 0],
                       preferred_element_type=jnp.float32) + bqkv_ref[l, 0][:, None, :]
        k = jnp.einsum('hld,hde->hle', xb, wqkv_ref[l, 1],
                       preferred_element_type=jnp.float32) + bqkv_ref[l, 1][:, None, :]
        v = jnp.einsum('hld,hde->hle', xb, wqkv_ref[l, 2],
                       preferred_element_type=jnp.float32) + bqkv_ref[l, 2][:, None, :]

        s = jnp.einsum('hle,hme->hlm', q.astype(jnp.bfloat16), k.astype(jnp.bfloat16),
                       preferred_element_type=jnp.float32)                 # (H, L, L)
        s = s + causal_bias[None, :, :]
        s = s - jnp.max(s, axis=-1, keepdims=True)
        p = jnp.exp(s)                                                     # f32 softmax
        p = p * pl.reciprocal(jnp.sum(p, axis=-1, keepdims=True), approx=True)

        ctx = jnp.einsum('hlm,hme->hle', p.astype(jnp.bfloat16), v.astype(jnp.bfloat16),
                         preferred_element_type=jnp.float32)               # (H, L, HD)
        # per-head output projections accumulated over heads (no concat / lane slicing)
        heads = jnp.einsum('hle,heo->hlo', ctx.astype(jnp.bfloat16), wo_ref[l],
                           preferred_element_type=jnp.float32)             # (H, L, D)
        x = x + jnp.sum(heads, axis=0) + bo_ref[l]

        # ----- MLP (QuickGELU) -------------------------------------------------
        xn = _layernorm(x, ln2w_ref[l], ln2b_ref[l])
        h1 = jnp.dot(xn.astype(jnp.bfloat16), w1_ref[l],
                     preferred_element_type=jnp.float32) + b1_ref[l]       # (L, MLP)
        h1 = h1 * jax.nn.sigmoid(1.702 * h1)
        h2 = jnp.dot(h1.astype(jnp.bfloat16), w2_ref[l],
                     preferred_element_type=jnp.float32) + b2_ref[l]       # (L, D)
        x = x + h2

    # ----- EOT-token gather (SMEM index) + ln_final + text_projection ----------
    xbuf_ref[...] = x
    idx = eot_ref[b]                                 # argmax(tokenized_prompts) position
    row = xbuf_ref[pl.ds(idx, 1), :]                 # (1, D) dynamic sublane gather
    rown = _layernorm(row, lnfw_ref[...], lnfb_ref[...])
    out = jnp.dot(rown.astype(jnp.bfloat16), proj_ref[...],
                  preferred_element_type=jnp.float32)                      # (1, E)
    o_ref[...] = out.reshape(1, 1, E)


# ----- wrapper ----------------------------------------------------------------
def _resident(arr):
    """Full-array block with constant index map: fetched once, resident across grid steps."""
    nd = arr.ndim
    return pl.BlockSpec(arr.shape, lambda b, eot, _nd=nd: (0,) * _nd)


def text_encoder_forward(prompts, tokenized_prompts, packed):
    # EOT selection assumes argmax(token id) marks the end-of-text token (CLIP BPE convention).
    eot_idx = jnp.argmax(tokenized_prompts, axis=-1).astype(jnp.int32)     # (B,)

    operands = (prompts, packed['pos'],
                packed['wqkv'], packed['bqkv'], packed['wo'], packed['bo'],
                packed['ln1w'], packed['ln1b'], packed['ln2w'], packed['ln2b'],
                packed['w1'], packed['b1'], packed['w2'], packed['b2'],
                packed['lnfw'], packed['lnfb'], packed['proj'])

    in_specs = ([pl.BlockSpec((1, L, D), lambda b, eot: (b, 0, 0))]
                + [_resident(a) for a in operands[1:]])

    flops = B * LAYERS * (6 * L * D * D              # qkv projections
                          + 4 * H * L * L * HD       # scores + context
                          + 2 * L * D * D            # output projection
                          + 4 * L * D * MLP)         # MLP
    flops += B * 2 * D * E
    transcendentals = B * LAYERS * (H * L * L + L * MLP)
    bytes_accessed = sum(int(a.nbytes) for a in operands) + int(eot_idx.nbytes) + B * E * 4

    out = pl.pallas_call(
        text_encoder_kernel,
        out_shape=jax.ShapeDtypeStruct((B, 1, E), jnp.float32),
        grid_spec=pltpu.PrefetchScalarGridSpec(
            num_scalar_prefetch=1,
            grid=(B,),
            in_specs=in_specs,
            out_specs=pl.BlockSpec((1, 1, E), lambda b, eot: (b, 0, 0)),
            scratch_shapes=[pltpu.VMEM((L, D), jnp.float32)],
        ),
        compiler_params=pltpu.CompilerParams(
            dimension_semantics=("parallel",),        # v7x: both TensorCores split the batch
            vmem_limit_bytes=32 * 1024 * 1024,
        ),
        cost_estimate=pl.CostEstimate(flops=flops, transcendentals=transcendentals,
                                      bytes_accessed=bytes_accessed),
    )(eot_idx, *operands)
    return out.reshape(B, E)


# ----- host-side weight repacking (layout + bf16 + scale folding) --------------
def pack_params(params):
    layers = params['layers']
    scale = jnp.float32(HD ** -0.5)

    def stack(fn):
        return jnp.stack([fn(p) for p in layers], axis=0)

    def qkv_w(p):
        w = p['qkv_w'].reshape(3, H, HD, D)          # [qkv, head, e, d]  (in_proj_weight rows)
        w = w.transpose(0, 1, 3, 2)                  # (3, H, D, HD): q[h,l,e] = xn[l,:] @ w[0,h,:,e]
        return w.at[0].multiply(scale)               # fold 1/sqrt(HD) into Q projection

    def qkv_b(p):
        bqkv = p['qkv_b'].reshape(3, H, HD)
        return bqkv.at[0].multiply(scale)

    return {
        'pos':  params['positional_embedding'][:L].astype(jnp.float32),               # (L, D)
        'wqkv': stack(qkv_w).astype(jnp.bfloat16),                                     # (LAYERS,3,H,D,HD)
        'bqkv': stack(qkv_b).astype(jnp.float32),                                      # (LAYERS,3,H,HD)
        'wo':   stack(lambda p: p['out_w'].T.reshape(H, HD, D)).astype(jnp.bfloat16),  # (LAYERS,H,HD,D)
        'bo':   stack(lambda p: p['out_b'].reshape(1, D)).astype(jnp.float32),
        'ln1w': stack(lambda p: p['ln1_w'].reshape(1, D)).astype(jnp.float32),
        'ln1b': stack(lambda p: p['ln1_b'].reshape(1, D)).astype(jnp.float32),
        'ln2w': stack(lambda p: p['ln2_w'].reshape(1, D)).astype(jnp.float32),
        'ln2b': stack(lambda p: p['ln2_b'].reshape(1, D)).astype(jnp.float32),
        'w1':   stack(lambda p: p['fc1_w'].T).astype(jnp.bfloat16),                    # (LAYERS, D, MLP)
        'b1':   stack(lambda p: p['fc1_b'].reshape(1, MLP)).astype(jnp.float32),
        'w2':   stack(lambda p: p['fc2_w'].T).astype(jnp.bfloat16),                    # (LAYERS, MLP, D)
        'b2':   stack(lambda p: p['fc2_b'].reshape(1, D)).astype(jnp.float32),
        'lnfw': params['ln_final_w'].reshape(1, D).astype(jnp.float32),
        'lnfb': params['ln_final_b'].reshape(1, D).astype(jnp.float32),
        'proj': params['text_projection'].astype(jnp.bfloat16),                        # (D, E)
    }


# ----- deterministic parameter init (PyTorch layout) ----------------------------
def init_params(key):
    keys = jax.random.split(key, 4 + 4 * LAYERS)
    ki = iter(keys)

    def nrm(shape, scale=0.02):
        return (scale * jax.random.normal(next(ki), shape)).astype(jnp.float32)

    params = {
        'positional_embedding': nrm((77, D), 0.01),          # CLIP keeps 77 positions
        'ln_final_w': jnp.ones((D,), jnp.float32),
        'ln_final_b': jnp.zeros((D,), jnp.float32),
        'text_projection': nrm((D, E), D ** -0.5),
        'layers': [],
    }
    for _ in range(LAYERS):
        params['layers'].append({
            'ln1_w': jnp.ones((D,), jnp.float32),
            'ln1_b': jnp.zeros((D,), jnp.float32),
            'qkv_w': nrm((3 * D, D)),                         # in_proj_weight
            'qkv_b': jnp.zeros((3 * D,), jnp.float32),
            'out_w': nrm((D, D)),                             # out_proj.weight
            'out_b': jnp.zeros((D,), jnp.float32),
            'ln2_w': jnp.ones((D,), jnp.float32),
            'ln2_b': jnp.zeros((D,), jnp.float32),
            'fc1_w': nrm((MLP, D)),                           # c_fc
            'fc1_b': jnp.zeros((MLP,), jnp.float32),
            'fc2_w': nrm((D, MLP)),                           # c_proj
            'fc2_b': jnp.zeros((D,), jnp.float32),
        })
    return params


if __name__ == "__main__":
    key = jax.random.PRNGKey(0)
    k1, k2, k3 = jax.random.split(key, 3)

    prompts = jax.random.normal(k1, (B, L, D), jnp.float32)               # learned prompt embeddings
    tokenized_prompts = jax.random.randint(k2, (B, L), 0, 1000, jnp.int32)
    params = init_params(k3)
    packed = pack_params(params)

    out = text_encoder_forward(prompts, tokenized_prompts, packed)
    out = jax.block_until_ready(out)
    assert out.shape == (B, E) and out.dtype == jnp.float32
    assert bool(jnp.all(jnp.isfinite(out)))
    print("KERNEL_OK")
</pallas_src>

<mosaic_0001>
module attributes {stable_mosaic.version = 11 : i64} {
  func.func @text_encoder_kernel(%arg0: i32, %arg1: memref<2xi32, #tpu.memory_space<smem>>, %arg2: memref<1x8x32xf32, #tpu.memory_space<vmem>>, %arg3: memref<8x32xf32, #tpu.memory_space<vmem>>, %arg4: memref<2x3x4x32x8xbf16, #tpu.memory_space<vmem>>, %arg5: memref<2x3x4x8xf32, #tpu.memory_space<vmem>>, %arg6: memref<2x4x8x32xbf16, #tpu.memory_space<vmem>>, %arg7: memref<2x1x32xf32, #tpu.memory_space<vmem>>, %arg8: memref<2x1x32xf32, #tpu.memory_space<vmem>>, %arg9: memref<2x1x32xf32, #tpu.memory_space<vmem>>, %arg10: memref<2x1x32xf32, #tpu.memory_space<vmem>>, %arg11: memref<2x1x32xf32, #tpu.memory_space<vmem>>, %arg12: memref<2x32x128xbf16, #tpu.memory_space<vmem>>, %arg13: memref<2x1x128xf32, #tpu.memory_space<vmem>>, %arg14: memref<2x128x32xbf16, #tpu.memory_space<vmem>>, %arg15: memref<2x1x32xf32, #tpu.memory_space<vmem>>, %arg16: memref<1x32xf32, #tpu.memory_space<vmem>>, %arg17: memref<1x32xf32, #tpu.memory_space<vmem>>, %arg18: memref<32x16xbf16, #tpu.memory_space<vmem>>, %arg19: memref<1x1x16xf32, #tpu.memory_space<vmem>>, %arg20: memref<8x32xf32, #tpu.memory_space<vmem>>) attributes {dimension_semantics = [#tpu.dimension_semantics<parallel>], iteration_bounds = array<i64: 2>, scalar_prefetch = 1 : i64, scratch_operands = 1 : i64, tpu.core_type = #tpu.core_type<tc>, window_params = [{transform_indices = @transform_0, window_bounds = array<i64: 1, 8, 32>}, {pipeline_mode = #tpu.pipeline_mode<synchronous>, transform_indices = @transform_1, window_bounds = array<i64: 8, 32>}, {pipeline_mode = #tpu.pipeline_mode<synchronous>, transform_indices = @transform_2, window_bounds = array<i64: 2, 3, 4, 32, 8>}, {pipeline_mode = #tpu.pipeline_mode<synchronous>, transform_indices = @transform_3, window_bounds = array<i64: 2, 3, 4, 8>}, {pipeline_mode = #tpu.pipeline_mode<synchronous>, transform_indices = @transform_4, window_bounds = array<i64: 2, 4, 8, 32>}, {pipeline_mode = #tpu.pipeline_mode<synchronous>, transform_indices = @transform_5, window_bounds = array<i64: 2, 1, 32>}, {pipeline_mode = #tpu.pipeline_mode<synchronous>, transform_indices = @transform_6, window_bounds = array<i64: 2, 1, 32>}, {pipeline_mode = #tpu.pipeline_mode<synchronous>, transform_indices = @transform_7, window_bounds = array<i64: 2, 1, 32>}, {pipeline_mode = #tpu.pipeline_mode<synchronous>, transform_indices = @transform_8, window_bounds = array<i64: 2, 1, 32>}, {pipeline_mode = #tpu.pipeline_mode<synchronous>, transform_indices = @transform_9, window_bounds = array<i64: 2, 1, 32>}, {pipeline_mode = #tpu.pipeline_mode<synchronous>, transform_indices = @transform_10, window_bounds = array<i64: 2, 32, 128>}, {pipeline_mode = #tpu.pipeline_mode<synchronous>, transform_indices = @transform_11, window_bounds = array<i64: 2, 1, 128>}, {pipeline_mode = #tpu.pipeline_mode<synchronous>, transform_indices = @transform_12, window_bounds = array<i64: 2, 128, 32>}, {pipeline_mode = #tpu.pipeline_mode<synchronous>, transform_indices = @transform_13, window_bounds = array<i64: 2, 1, 32>}, {pipeline_mode = #tpu.pipeline_mode<synchronous>, transform_indices = @transform_14, window_bounds = array<i64: 1, 32>}, {pipeline_mode = #tpu.pipeline_mode<synchronous>, transform_indices = @transform_15, window_bounds = array<i64: 1, 32>}, {pipeline_mode = #tpu.pipeline_mode<synchronous>, transform_indices = @transform_16, window_bounds = array<i64: 32, 16>}, {transform_indices = @transform_17, window_bounds = array<i64: 1, 1, 16>}]} {
    %c0 = arith.constant 0 : index
    %c0_0 = arith.constant 0 : index
    %c0_1 = arith.constant 0 : index
    %0 = vector.load %arg2[%c0, %c0_0, %c0_1] : memref<1x8x32xf32, #tpu.memory_space<vmem>>, vector<1x8x32xf32>
    %1 = vector.shape_cast %0 : vector<1x8x32xf32> to vector<8x32xf32>
    %c0_2 = arith.constant 0 : index
    %c0_3 = arith.constant 0 : index
    %2 = vector.load %arg3[%c0_2, %c0_3] : memref<8x32xf32, #tpu.memory_space<vmem>>, vector<8x32xf32>
    %3 = arith.addf %1, %2 : vector<8x32xf32>
    %4 = tpu.iota {dimensions = array<i32: 0>} : vector<8x8xi32>
    %5 = tpu.iota {dimensions = array<i32: 1>} : vector<8x8xi32>
    %6 = arith.cmpi sgt, %5, %4 : vector<8x8xi32>
    %cst = arith.constant -1.000000e+30 : f32
    %cst_4 = arith.constant 0.000000e+00 : f32
    %7 = vector.broadcast %cst : f32 to vector<8x8xf32>
    %8 = vector.broadcast %cst_4 : f32 to vector<8x8xf32>
    %9 = arith.select %6, %7, %8 : vector<8x8xi1>, vector<8x8xf32>
    %c0_5 = arith.constant 0 : index
    %c0_6 = arith.constant 0 : index
    %c0_7 = arith.constant 0 : index
    %10 = vector.load %arg8[%c0_5, %c0_6, %c0_7] : memref<2x1x32xf32, #tpu.memory_space<vmem>>, vector<1x1x32xf32>
    %11 = vector.shape_cast %10 : vector<1x1x32xf32> to vector<1x32xf32>
    %c0_8 = arith.constant 0 : index
    %c0_9 = arith.constant 0 : index
    %c0_10 = arith.constant 0 : index
    %12 = vector.load %arg9[%c0_8, %c0_9, %c0_10] : memref<2x1x32xf32, #tpu.memory_space<vmem>>, vector<1x1x32xf32>
    %13 = vector.shape_cast %12 : vector<1x1x32xf32> to vector<1x32xf32>
    %cst_11 = arith.constant dense<0.000000e+00> : vector<8xf32>
    %14 = vector.multi_reduction <add>, %3, %cst_11 [1] : vector<8x32xf32> to vector<8xf32>
    %15 = vector.shape_cast %14 : vector<8xf32> to vector<8x1xf32>
    %cst_12 = arith.constant 3.200000e+01 : f32
    %16 = vector.broadcast %cst_12 : f32 to vector<8x1xf32>
    %17 = arith.divf %15, %16 : vector<8x1xf32>
    %18 = vector.broadcast %17 : vector<8x1xf32> to vector<8x32xf32>
    %19 = arith.subf %3, %18 : vector<8x32xf32>
    %20 = arith.mulf %19, %19 : vector<8x32xf32>
    %cst_13 = arith.constant dense<0.000000e+00> : vector<8xf32>
    %21 = vector.multi_reduction <add>, %20, %cst_13 [1] : vector<8x32xf32> to vector<8xf32>
    %22 = vector.shape_cast %21 : vector<8xf32> to vector<8x1xf32>
    %cst_14 = arith.constant 3.200000e+01 : f32
    %23 = vector.broadcast %cst_14 : f32 to vector<8x1xf32>
    %24 = arith.divf %22, %23 : vector<8x1xf32>
    %25 = vector.broadcast %17 : vector<8x1xf32> to vector<8x32xf32>
    %26 = arith.subf %3, %25 : vector<8x32xf32>
    %cst_15 = arith.constant 9.99999974E-6 : f32
    %27 = vector.broadcast %cst_15 : f32 to vector<8x1xf32>
    %28 = arith.addf %24, %27 : vector<8x1xf32>
    %29 = math.rsqrt %28 : vector<8x1xf32>
    %30 = vector.broadcast %29 : vector<8x1xf32> to vector<8x32xf32>
    %31 = arith.mulf %26, %30 : vector<8x32xf32>
    %32 = vector.broadcast %11 : vector<1x32xf32> to vector<8x32xf32>
    %33 = arith.mulf %31, %32 : vector<8x32xf32>
    %34 = vector.broadcast %13 : vector<1x32xf32> to vector<8x32xf32>
    %35 = arith.addf %33, %34 : vector<8x32xf32>
    %36 = arith.truncf %35 : vector<8x32xf32> to vector<8x32xbf16>
    %37 = vector.shape_cast %36 : vector<8x32xbf16> to vector<1x8x32xbf16>
    %38 = vector.shape_cast %37 : vector<1x8x32xbf16> to vector<1x8x32xbf16>
    %39 = vector.broadcast %38 : vector<1x8x32xbf16> to vector<4x8x32xbf16>
    %c0_16 = arith.constant 0 : index
    %c0_17 = arith.constant 0 : index
    %c0_18 = arith.constant 0 : index
    %c0_19 = arith.constant 0 : index
    %c0_20 = arith.constant 0 : index
    %40 = vector.load %arg4[%c0_16, %c0_17, %c0_18, %c0_19, %c0_20] : memref<2x3x4x32x8xbf16, #tpu.memory_space<vmem>>, vector<1x1x4x32x8xbf16>
    %41 = vector.shape_cast %40 : vector<1x1x4x32x8xbf16> to vector<4x32x8xbf16>
    "tpu.trace_start"() <{level = 10 : i32, message = "hld,hde->hle"}> : () -> ()
    %cst_21 = arith.constant dense<0.000000e+00> : vector<4x8x8xf32>
    %42 = tpu.matmul %39, %41, %cst_21 {dimension_numbers = #tpu.dot_dimension_numbers<[2], [1], [1], [2], [0, 0, 0, 1, 1, 2], [0], [0]>} : vector<4x8x32xbf16>, vector<4x32x8xbf16>, vector<4x8x8xf32> -> vector<4x8x8xf32>
    "tpu.trace_stop"() : () -> ()
    %c0_22 = arith.constant 0 : index
    %c0_23 = arith.constant 0 : index
    %c0_24 = arith.constant 0 : index
    %c0_25 = arith.constant 0 : index
    %43 = vector.load %arg5[%c0_22, %c0_23, %c0_24, %c0_25] : memref<2x3x4x8xf32, #tpu.memory_space<vmem>>, vector<1x1x4x8xf32>
    %44 = vector.shape_cast %43 : vector<1x1x4x8xf32> to vector<4x8xf32>
    %45 = vector.shape_cast %44 : vector<4x8xf32> to vector<4x1x8xf32>
    %46 = vector.broadcast %45 : vector<4x1x8xf32> to vector<4x8x8xf32>
    %47 = arith.addf %42, %46 : vector<4x8x8xf32>
    %c0_26 = arith.constant 0 : index
    %c1 = arith.constant 1 : index
    %c0_27 = arith.constant 0 : index
    %c0_28 = arith.constant 0 : index
    %c0_29 = arith.constant 0 : index
    %48 = vector.load %arg4[%c0_26, %c1, %c0_27, %c0_28, %c0_29] : memref<2x3x4x32x8xbf16, #tpu.memory_space<vmem>>, vector<1x1x4x32x8xbf16>
    %49 = vector.shape_cast %48 : vector<1x1x4x32x8xbf16> to vector<4x32x8xbf16>
    "tpu.trace_start"() <{level = 10 : i32, message = "hld,hde->hle"}> : () -> ()
    %cst_30 = arith.constant dense<0.000000e+00> : vector<4x8x8xf32>
    %50 = tpu.matmul %39, %49, %cst_30 {dimension_numbers = #tpu.dot_dimension_numbers<[2], [1], [1], [2], [0, 0, 0, 1, 1, 2], [0], [0]>} : vector<4x8x32xbf16>, vector<4x32x8xbf16>, vector<4x8x8xf32> -> vector<4x8x8xf32>
    "tpu.trace_stop"() : () -> ()
    %c0_31 = arith.constant 0 : index
    %c1_32 = arith.constant 1 : index
    %c0_33 = arith.constant 0 : index
    %c0_34 = arith.constant 0 : index
    %51 = vector.load %arg5[%c0_31, %c1_32, %c0_33, %c0_34] : memref<2x3x4x8xf32, #tpu.memory_space<vmem>>, vector<1x1x4x8xf32>
    %52 = vector.shape_cast %51 : vector<1x1x4x8xf32> to vector<4x8xf32>
    %53 = vector.shape_cast %52 : vector<4x8xf32> to vector<4x1x8xf32>
    %54 = vector.broadcast %53 : vector<4x1x8xf32> to vector<4x8x8xf32>
    %55 = arith.addf %50, %54 : vector<4x8x8xf32>
    %c0_35 = arith.constant 0 : index
    %c2 = arith.constant 2 : index
    %c0_36 = arith.constant 0 : index
    %c0_37 = arith.constant 0 : index
    %c0_38 = arith.constant 0 : index
    %56 = vector.load %arg4[%c0_35, %c2, %c0_36, %c0_37, %c0_38] : memref<2x3x4x32x8xbf16, #tpu.memory_space<vmem>>, vector<1x1x4x32x8xbf16>
    %57 = vector.shape_cast %56 : vector<1x1x4x32x8xbf16> to vector<4x32x8xbf16>
    "tpu.trace_start"() <{level = 10 : i32, message = "hld,hde->hle"}> : () -> ()
    %cst_39 = arith.constant dense<0.000000e+00> : vector<4x8x8xf32>
    %58 = tpu.matmul %39, %57, %cst_39 {dimension_numbers = #tpu.dot_dimension_numbers<[2], [1], [1], [2], [0, 0, 0, 1, 1, 2], [0], [0]>} : vector<4x8x32xbf16>, vector<4x32x8xbf16>, vector<4x8x8xf32> -> vector<4x8x8xf32>
    "tpu.trace_stop"() : () -> ()
    %c0_40 = arith.constant 0 : index
    %c2_41 = arith.constant 2 : index
    %c0_42 = arith.constant 0 : index
    %c0_43 = arith.constant 0 : index
    %59 = vector.load %arg5[%c0_40, %c2_41, %c0_42, %c0_43] : memref<2x3x4x8xf32, #tpu.memory_space<vmem>>, vector<1x1x4x8xf32>
    %60 = vector.shape_cast %59 : vector<1x1x4x8xf32> to vector<4x8xf32>
    %61 = vector.shape_cast %60 : vector<4x8xf32> to vector<4x1x8xf32>
    %62 = vector.broadcast %61 : vector<4x1x8xf32> to vector<4x8x8xf32>
    %63 = arith.addf %58, %62 : vector<4x8x8xf32>
    %64 = arith.truncf %47 : vector<4x8x8xf32> to vector<4x8x8xbf16>
    %65 = arith.truncf %55 : vector<4x8x8xf32> to vector<4x8x8xbf16>
    "tpu.trace_start"() <{level = 10 : i32, message = "hle,hme->hlm"}> : () -> ()
    %cst_44 = arith.constant dense<0.000000e+00> : vector<4x8x8xf32>
    %66 = tpu.matmul %64, %65, %cst_44 {dimension_numbers = #tpu.dot_dimension_numbers<[2], [2], [1], [1], [0, 0, 0, 1, 1, 1], [0], [0]>} : vector<4x8x8xbf16>, vector<4x8x8xbf16>, vector<4x8x8xf32> -> vector<4x8x8xf32>
    "tpu.trace_stop"() : () -> ()
    %67 = vector.shape_cast %9 : vector<8x8xf32> to vector<1x8x8xf32>
    %68 = vector.broadcast %67 : vector<1x8x8xf32> to vector<4x8x8xf32>
    %69 = arith.addf %66, %68 : vector<4x8x8xf32>
    %cst_45 = arith.constant dense<0xFF800000> : vector<4x8xf32>
    %70 = vector.multi_reduction <maximumf>, %69, %cst_45 [2] : vector<4x8x8xf32> to vector<4x8xf32>
    %71 = vector.shape_cast %70 : vector<4x8xf32> to vector<4x8x1xf32>
    %72 = vector.broadcast %71 : vector<4x8x1xf32> to vector<4x8x8xf32>
    %73 = arith.subf %69, %72 : vector<4x8x8xf32>
    %74 = math.exp %73 : vector<4x8x8xf32>
    %cst_46 = arith.constant dense<0.000000e+00> : vector<4x8xf32>
    %75 = vector.multi_reduction <add>, %74, %cst_46 [2] : vector<4x8x8xf32> to vector<4x8xf32>
    %76 = vector.shape_cast %75 : vector<4x8xf32> to vector<4x8x1xf32>
    %77 = tpu.reciprocal %76 {approx = true} : vector<4x8x1xf32> -> vector<4x8x1xf32>
    %78 = vector.broadcast %77 : vector<4x8x1xf32> to vector<4x8x8xf32>
    %79 = arith.mulf %74, %78 : vector<4x8x8xf32>
    %80 = arith.truncf %79 : vector<4x8x8xf32> to vector<4x8x8xbf16>
    %81 = arith.truncf %63 : vector<4x8x8xf32> to vector<4x8x8xbf16>
    "tpu.trace_start"() <{level = 10 : i32, message = "hlm,hme->hle"}> : () -> ()
    %cst_47 = arith.constant dense<0.000000e+00> : vector<4x8x8xf32>
    %82 = tpu.matmul %80, %81, %cst_47 {dimension_numbers = #tpu.dot_dimension_numbers<[2], [1], [1], [2], [0, 0, 0, 1, 1, 2], [0], [0]>} : vector<4x8x8xbf16>, vector<4x8x8xbf16>, vector<4x8x8xf32> -> vector<4x8x8xf32>
    "tpu.trace_stop"() : () -> ()
    %83 = arith.truncf %82 : vector<4x8x8xf32> to vector<4x8x8xbf16>
    %c0_48 = arith.constant 0 : index
    %c0_49 = arith.constant 0 : index
    %c0_50 = arith.constant 0 : index
    %c0_51 = arith.constant 0 : index
    %84 = vector.load %arg6[%c0_48, %c0_49, %c0_50, %c0_51] : memref<2x4x8x32xbf16, #tpu.memory_space<vmem>>, vector<1x4x8x32xbf16>
    %85 = vector.shape_cast %84 : vector<1x4x8x32xbf16> to vector<4x8x32xbf16>
    "tpu.trace_start"() <{level = 10 : i32, message = "hle,heo->hlo"}> : () -> ()
    %cst_52 = arith.constant dense<0.000000e+00> : vector<4x8x32xf32>
    %86 = tpu.matmul %83, %85, %cst_52 {dimension_numbers = #tpu.dot_dimension_numbers<[2], [1], [1], [2], [0, 0, 0, 1, 1, 2], [0], [0]>} : vector<4x8x8xbf16>, vector<4x8x32xbf16>, vector<4x8x32xf32> -> vector<4x8x32xf32>
    "tpu.trace_stop"() : () -> ()
    %cst_53 = arith.constant dense<0.000000e+00> : vector<8x32xf32>
    %87 = vector.multi_reduction <add>, %86, %cst_53 [0] : vector<4x8x32xf32> to vector<8x32xf32>
    %88 = arith.addf %3, %87 : vector<8x32xf32>
    %c0_54 = arith.constant 0 : index
    %c0_55 = arith.constant 0 : index
    %c0_56 = arith.constant 0 : index
    %89 = vector.load %arg7[%c0_54, %c0_55, %c0_56] : memref<2x1x32xf32, #tpu.memory_space<vmem>>, vector<1x1x32xf32>
    %90 = vector.shape_cast %89 : vector<1x1x32xf32> to vector<1x32xf32>
    %91 = vector.broadcast %90 : vector<1x32xf32> to vector<8x32xf32>
    %92 = arith.addf %88, %91 : vector<8x32xf32>
    %c0_57 = arith.constant 0 : index
    %c0_58 = arith.constant 0 : index
    %c0_59 = arith.constant 0 : index
    %93 = vector.load %arg10[%c0_57, %c0_58, %c0_59] : memref<2x1x32xf32, #tpu.memory_space<vmem>>, vector<1x1x32xf32>
    %94 = vector.shape_cast %93 : vector<1x1x32xf32> to vector<1x32xf32>
    %c0_60 = arith.constant 0 : index
    %c0_61 = arith.constant 0 : index
    %c0_62 = arith.constant 0 : index
    %95 = vector.load %arg11[%c0_60, %c0_61, %c0_62] : memref<2x1x32xf32, #tpu.memory_space<vmem>>, vector<1x1x32xf32>
    %96 = vector.shape_cast %95 : vector<1x1x32xf32> to vector<1x32xf32>
    %cst_63 = arith.constant dense<0.000000e+00> : vector<8xf32>
    %97 = vector.multi_reduction <add>, %92, %cst_63 [1] : vector<8x32xf32> to vector<8xf32>
    %98 = vector.shape_cast %97 : vector<8xf32> to vector<8x1xf32>
    %cst_64 = arith.constant 3.200000e+01 : f32
    %99 = vector.broadcast %cst_64 : f32 to vector<8x1xf32>
    %100 = arith.divf %98, %99 : vector<8x1xf32>
    %101 = vector.broadcast %100 : vector<8x1xf32> to vector<8x32xf32>
    %102 = arith.subf %92, %101 : vector<8x32xf32>
    %103 = arith.mulf %102, %102 : vector<8x32xf32>
    %cst_65 = arith.constant dense<0.000000e+00> : vector<8xf32>
    %104 = vector.multi_reduction <add>, %103, %cst_65 [1] : vector<8x32xf32> to vector<8xf32>
    %105 = vector.shape_cast %104 : vector<8xf32> to vector<8x1xf32>
    %cst_66 = arith.constant 3.200000e+01 : f32
    %106 = vector.broadcast %cst_66 : f32 to vector<8x1xf32>
    %107 = arith.divf %105, %106 : vector<8x1xf32>
    %108 = vector.broadcast %100 : vector<8x1xf32> to vector<8x32xf32>
    %109 = arith.subf %92, %108 : vector<8x32xf32>
    %cst_67 = arith.constant 9.99999974E-6 : f32
    %110 = vector.broadcast %cst_67 : f32 to vector<8x1xf32>
    %111 = arith.addf %107, %110 : vector<8x1xf32>
    %112 = math.rsqrt %111 : vector<8x1xf32>
    %113 = vector.broadcast %112 : vector<8x1xf32> to vector<8x32xf32>
    %114 = arith.mulf %109, %113 : vector<8x32xf32>
    %115 = vector.broadcast %94 : vector<1x32xf32> to vector<8x32xf32>
    %116 = arith.mulf %114, %115 : vector<8x32xf32>
    %117 = vector.broadcast %96 : vector<1x32xf32> to vector<8x32xf32>
    %118 = arith.addf %116, %117 : vector<8x32xf32>
    %119 = arith.truncf %118 : vector<8x32xf32> to vector<8x32xbf16>
    %c0_68 = arith.constant 0 : index
    %c0_69 = arith.constant 0 : index
    %c0_70 = arith.constant 0 : index
    %120 = vector.load %arg12[%c0_68, %c0_69, %c0_70] : memref<2x32x128xbf16, #tpu.memory_space<vmem>>, vector<1x32x128xbf16>
    %121 = vector.shape_cast %120 : vector<1x32x128xbf16> to vector<32x128xbf16>
    %cst_71 = arith.constant dense<0.000000e+00> : vector<8x128xf32>
    %122 = tpu.matmul %119, %121, %cst_71 {dimension_numbers = #tpu.dot_dimension_numbers<[1], [0], [0], [1], [0, 0, 1, 1], [], []>} : vector<8x32xbf16>, vector<32x128xbf16>, vector<8x128xf32> -> vector<8x128xf32>
    %c0_72 = arith.constant 0 : index
    %c0_73 = arith.constant 0 : index
    %c0_74 = arith.constant 0 : index
    %123 = vector.load %arg13[%c0_72, %c0_73, %c0_74] : memref<2x1x128xf32, #tpu.memory_space<vmem>>, vector<1x1x128xf32>
    %124 = vector.shape_cast %123 : vector<1x1x128xf32> to vector<1x128xf32>
    %125 = vector.broadcast %124 : vector<1x128xf32> to vector<8x128xf32>
    %126 = arith.addf %122, %125 : vector<8x128xf32>
    %cst_75 = arith.constant 1.702000e+00 : f32
    %127 = vector.broadcast %cst_75 : f32 to vector<8x128xf32>
    %128 = arith.mulf %127, %126 : vector<8x128xf32>
    %129 = arith.negf %128 : vector<8x128xf32>
    %130 = math.exp %129 : vector<8x128xf32>
    %cst_76 = arith.constant 1.000000e+00 : f32
    %131 = vector.broadcast %cst_76 : f32 to vector<8x128xf32>
    %132 = arith.addf %131, %130 : vector<8x128xf32>
    %133 = arith.divf %131, %132 : vector<8x128xf32>
    %134 = arith.mulf %126, %133 : vector<8x128xf32>
    %135 = arith.truncf %134 : vector<8x128xf32> to vector<8x128xbf16>
    %c0_77 = arith.constant 0 : index
    %c0_78 = arith.constant 0 : index
    %c0_79 = arith.constant 0 : index
    %136 = vector.load %arg14[%c0_77, %c0_78, %c0_79] : memref<2x128x32xbf16, #tpu.memory_space<vmem>>, vector<1x128x32xbf16>
    %137 = vector.shape_cast %136 : vector<1x128x32xbf16> to vector<128x32xbf16>
    %cst_80 = arith.constant dense<0.000000e+00> : vector<8x32xf32>
    %138 = tpu.matmul %135, %137, %cst_80 {dimension_numbers = #tpu.dot_dimension_numbers<[1], [0], [0], [1], [0, 0, 1, 1], [], []>} : vector<8x128xbf16>, vector<128x32xbf16>, vector<8x32xf32> -> vector<8x32xf32>
    %c0_81 = arith.constant 0 : index
    %c0_82 = arith.constant 0 : index
    %c0_83 = arith.constant 0 : index
    %139 = vector.load %arg15[%c0_81, %c0_82, %c0_83] : memref<2x1x32xf32, #tpu.memory_space<vmem>>, vector<1x1x32xf32>
    %140 = vector.shape_cast %139 : vector<1x1x32xf32> to vector<1x32xf32>
    %141 = vector.broadcast %140 : vector<1x32xf32> to vector<8x32xf32>
    %142 = arith.addf %138, %141 : vector<8x32xf32>
    %143 = arith.addf %92, %142 : vector<8x32xf32>
    %c1_84 = arith.constant 1 : index
    %c0_85 = arith.constant 0 : index
    %c0_86 = arith.constant 0 : index
    %144 = vector.load %arg8[%c1_84, %c0_85, %c0_86] : memref<2x1x32xf32, #tpu.memory_space<vmem>>, vector<1x1x32xf32>
    %145 = vector.shape_cast %144 : vector<1x1x32xf32> to vector<1x32xf32>
    %c1_87 = arith.constant 1 : index
    %c0_88 = arith.constant 0 : index
    %c0_89 = arith.constant 0 : index
    %146 = vector.load %arg9[%c1_87, %c0_88, %c0_89] : memref<2x1x32xf32, #tpu.memory_space<vmem>>, vector<1x1x32xf32>
    %147 = vector.shape_cast %146 : vector<1x1x32xf32> to vector<1x32xf32>
    %cst_90 = arith.constant dense<0.000000e+00> : vector<8xf32>
    %148 = vector.multi_reduction <add>, %143, %cst_90 [1] : vector<8x32xf32> to vector<8xf32>
    %149 = vector.shape_cast %148 : vector<8xf32> to vector<8x1xf32>
    %cst_91 = arith.constant 3.200000e+01 : f32
    %150 = vector.broadcast %cst_91 : f32 to vector<8x1xf32>
    %151 = arith.divf %149, %150 : vector<8x1xf32>
    %152 = vector.broadcast %151 : vector<8x1xf32> to vector<8x32xf32>
    %153 = arith.subf %143, %152 : vector<8x32xf32>
    %154 = arith.mulf %153, %153 : vector<8x32xf32>
    %cst_92 = arith.constant dense<0.000000e+00> : vector<8xf32>
    %155 = vector.multi_reduction <add>, %154, %cst_92 [1] : vector<8x32xf32> to vector<8xf32>
    %156 = vector.shape_cast %155 : vector<8xf32> to vector<8x1xf32>
    %cst_93 = arith.constant 3.200000e+01 : f32
    %157 = vector.broadcast %cst_93 : f32 to vector<8x1xf32>
    %158 = arith.divf %156, %157 : vector<8x1xf32>
    %159 = vector.broadcast %151 : vector<8x1xf32> to vector<8x32xf32>
    %160 = arith.subf %143, %159 : vector<8x32xf32>
    %cst_94 = arith.constant 9.99999974E-6 : f32
    %161 = vector.broadcast %cst_94 : f32 to vector<8x1xf32>
    %162 = arith.addf %158, %161 : vector<8x1xf32>
    %163 = math.rsqrt %162 : vector<8x1xf32>
    %164 = vector.broadcast %163 : vector<8x1xf32> to vector<8x32xf32>
    %165 = arith.mulf %160, %164 : vector<8x32xf32>
    %166 = vector.broadcast %145 : vector<1x32xf32> to vector<8x32xf32>
    %167 = arith.mulf %165, %166 : vector<8x32xf32>
    %168 = vector.broadcast %147 : vector<1x32xf32> to vector<8x32xf32>
    %169 = arith.addf %167, %168 : vector<8x32xf32>
    %170 = arith.truncf %169 : vector<8x32xf32> to vector<8x32xbf16>
    %171 = vector.shape_cast %170 : vector<8x32xbf16> to vector<1x8x32xbf16>
    %172 = vector.shape_cast %171 : vector<1x8x32xbf16> to vector<1x8x32xbf16>
    %173 = vector.broadcast %172 : vector<1x8x32xbf16> to vector<4x8x32xbf16>
    %c1_95 = arith.constant 1 : index
    %c0_96 = arith.constant 0 : index
    %c0_97 = arith.constant 0 : index
    %c0_98 = arith.constant 0 : index
    %c0_99 = arith.constant 0 : index
    %174 = vector.load %arg4[%c1_95, %c0_96, %c0_97, %c0_98, %c0_99] : memref<2x3x4x32x8xbf16, #tpu.memory_space<vmem>>, vector<1x1x4x32x8xbf16>
    %175 = vector.shape_cast %174 : vector<1x1x4x32x8xbf16> to vector<4x32x8xbf16>
    "tpu.trace_start"() <{level = 10 : i32, message = "hld,hde->hle"}> : () -> ()
    %cst_100 = arith.constant dense<0.000000e+00> : vector<4x8x8xf32>
    %176 = tpu.matmul %173, %175, %cst_100 {dimension_numbers = #tpu.dot_dimension_numbers<[2], [1], [1], [2], [0, 0, 0, 1, 1, 2], [0], [0]>} : vector<4x8x32xbf16>, vector<4x32x8xbf16>, vector<4x8x8xf32> -> vector<4x8x8xf32>
    "tpu.trace_stop"() : () -> ()
    %c1_101 = arith.constant 1 : index
    %c0_102 = arith.constant 0 : index
    %c0_103 = arith.constant 0 : index
    %c0_104 = arith.constant 0 : index
    %177 = vector.load %arg5[%c1_101, %c0_102, %c0_103, %c0_104] : memref<2x3x4x8xf32, #tpu.memory_space<vmem>>, vector<1x1x4x8xf32>
    %178 = vector.shape_cast %177 : vector<1x1x4x8xf32> to vector<4x8xf32>
    %179 = vector.shape_cast %178 : vector<4x8xf32> to vector<4x1x8xf32>
    %180 = vector.broadcast %179 : vector<4x1x8xf32> to vector<4x8x8xf32>
    %181 = arith.addf %176, %180 : vector<4x8x8xf32>
    %c1_105 = arith.constant 1 : index
    %c1_106 = arith.constant 1 : index
    %c0_107 = arith.constant 0 : index
    %c0_108 = arith.constant 0 : index
    %c0_109 = arith.constant 0 : index
    %182 = vector.load %arg4[%c1_105, %c1_106, %c0_107, %c0_108, %c0_109] : memref<2x3x4x32x8xbf16, #tpu.memory_space<vmem>>, vector<1x1x4x32x8xbf16>
    %183 = vector.shape_cast %182 : vector<1x1x4x32x8xbf16> to vector<4x32x8xbf16>
    "tpu.trace_start"() <{level = 10 : i32, message = "hld,hde->hle"}> : () -> ()
    %cst_110 = arith.constant dense<0.000000e+00> : vector<4x8x8xf32>
    %184 = tpu.matmul %173, %183, %cst_110 {dimension_numbers = #tpu.dot_dimension_numbers<[2], [1], [1], [2], [0, 0, 0, 1, 1, 2], [0], [0]>} : vector<4x8x32xbf16>, vector<4x32x8xbf16>, vector<4x8x8xf32> -> vector<4x8x8xf32>
    "tpu.trace_stop"() : () -> ()
    %c1_111 = arith.constant 1 : index
    %c1_112 = arith.constant 1 : index
    %c0_113 = arith.constant 0 : index
    %c0_114 = arith.constant 0 : index
    %185 = vector.load %arg5[%c1_111, %c1_112, %c0_113, %c0_114] : memref<2x3x4x8xf32, #tpu.memory_space<vmem>>, vector<1x1x4x8xf32>
    %186 = vector.shape_cast %185 : vector<1x1x4x8xf32> to vector<4x8xf32>
    %187 = vector.shape_cast %186 : vector<4x8xf32> to vector<4x1x8xf32>
    %188 = vector.broadcast %187 : vector<4x1x8xf32> to vector<4x8x8xf32>
    %189 = arith.addf %184, %188 : vector<4x8x8xf32>
    %c1_115 = arith.constant 1 : index
    %c2_116 = arith.constant 2 : index
    %c0_117 = arith.constant 0 : index
    %c0_118 = arith.constant 0 : index
    %c0_119 = arith.constant 0 : index
    %190 = vector.load %arg4[%c1_115, %c2_116, %c0_117, %c0_118, %c0_119] : memref<2x3x4x32x8xbf16, #tpu.memory_space<vmem>>, vector<1x1x4x32x8xbf16>
    %191 = vector.shape_cast %190 : vector<1x1x4x32x8xbf16> to vector<4x32x8xbf16>
    "tpu.trace_start"() <{level = 10 : i32, message = "hld,hde->hle"}> : () -> ()
    %cst_120 = arith.constant dense<0.000000e+00> : vector<4x8x8xf32>
    %192 = tpu.matmul %173, %191, %cst_120 {dimension_numbers = #tpu.dot_dimension_numbers<[2], [1], [1], [2], [0, 0, 0, 1, 1, 2], [0], [0]>} : vector<4x8x32xbf16>, vector<4x32x8xbf16>, vector<4x8x8xf32> -> vector<4x8x8xf32>
    "tpu.trace_stop"() : () -> ()
    %c1_121 = arith.constant 1 : index
    %c2_122 = arith.constant 2 : index
    %c0_123 = arith.constant 0 : index
    %c0_124 = arith.constant 0 : index
    %193 = vector.load %arg5[%c1_121, %c2_122, %c0_123, %c0_124] : memref<2x3x4x8xf32, #tpu.memory_space<vmem>>, vector<1x1x4x8xf32>
    %194 = vector.shape_cast %193 : vector<1x1x4x8xf32> to vector<4x8xf32>
    %195 = vector.shape_cast %194 : vector<4x8xf32> to vector<4x1x8xf32>
    %196 = vector.broadcast %195 : vector<4x1x8xf32> to vector<4x8x8xf32>
    %197 = arith.addf %192, %196 : vector<4x8x8xf32>
    %198 = arith.truncf %181 : vector<4x8x8xf32> to vector<4x8x8xbf16>
    %199 = arith.truncf %189 : vector<4x8x8xf32> to vector<4x8x8xbf16>
    "tpu.trace_start"() <{level = 10 : i32, message = "hle,hme->hlm"}> : () -> ()
    %cst_125 = arith.constant dense<0.000000e+00> : vector<4x8x8xf32>
    %200 = tpu.matmul %198, %199, %cst_125 {dimension_numbers = #tpu.dot_dimension_numbers<[2], [2], [1], [1], [0, 0, 0, 1, 1, 1], [0], [0]>} : vector<4x8x8xbf16>, vector<4x8x8xbf16>, vector<4x8x8xf32> -> vector<4x8x8xf32>
    "tpu.trace_stop"() : () -> ()
    %201 = vector.shape_cast %9 : vector<8x8xf32> to vector<1x8x8xf32>
    %202 = vector.broadcast %201 : vector<1x8x8xf32> to vector<4x8x8xf32>
    %203 = arith.addf %200, %202 : vector<4x8x8xf32>
    %cst_126 = arith.constant dense<0xFF800000> : vector<4x8xf32>
    %204 = vector.multi_reduction <maximumf>, %203, %cst_126 [2] : vector<4x8x8xf32> to vector<4x8xf32>
    %205 = vector.shape_cast %204 : vector<4x8xf32> to vector<4x8x1xf32>
    %206 = vector.broadcast %205 : vector<4x8x1xf32> to vector<4x8x8xf32>
    %207 = arith.subf %203, %206 : vector<4x8x8xf32>
    %208 = math.exp %207 : vector<4x8x8xf32>
    %cst_127 = arith.constant dense<0.000000e+00> : vector<4x8xf32>
    %209 = vector.multi_reduction <add>, %208, %cst_127 [2] : vector<4x8x8xf32> to vector<4x8xf32>
    %210 = vector.shape_cast %209 : vector<4x8xf32> to vector<4x8x1xf32>
    %211 = tpu.reciprocal %210 {approx = true} : vector<4x8x1xf32> -> vector<4x8x1xf32>
    %212 = vector.broadcast %211 : vector<4x8x1xf32> to vector<4x8x8xf32>
    %213 = arith.mulf %208, %212 : vector<4x8x8xf32>
    %214 = arith.truncf %213 : vector<4x8x8xf32> to vector<4x8x8xbf16>
    %215 = arith.truncf %197 : vector<4x8x8xf32> to vector<4x8x8xbf16>
    "tpu.trace_start"() <{level = 10 : i32, message = "hlm,hme->hle"}> : () -> ()
    %cst_128 = arith.constant dense<0.000000e+00> : vector<4x8x8xf32>
    %216 = tpu.matmul %214, %215, %cst_128 {dimension_numbers = #tpu.dot_dimension_numbers<[2], [1], [1], [2], [0, 0, 0, 1, 1, 2], [0], [0]>} : vector<4x8x8xbf16>, vector<4x8x8xbf16>, vector<4x8x8xf32> -> vector<4x8x8xf32>
    "tpu.trace_stop"() : () -> ()
    %217 = arith.truncf %216 : vector<4x8x8xf32> to vector<4x8x8xbf16>
    %c1_129 = arith.constant 1 : index
    %c0_130 = arith.constant 0 : index
    %c0_131 = arith.constant 0 : index
    %c0_132 = arith.constant 0 : index
    %218 = vector.load %arg6[%c1_129, %c0_130, %c0_131, %c0_132] : memref<2x4x8x32xbf16, #tpu.memory_space<vmem>>, vector<1x4x8x32xbf16>
    %219 = vector.shape_cast %218 : vector<1x4x8x32xbf16> to vector<4x8x32xbf16>
    "tpu.trace_start"() <{level = 10 : i32, message = "hle,heo->hlo"}> : () -> ()
    %cst_133 = arith.constant dense<0.000000e+00> : vector<4x8x32xf32>
    %220 = tpu.matmul %217, %219, %cst_133 {dimension_numbers = #tpu.dot_dimension_numbers<[2], [1], [1], [2], [0, 0, 0, 1, 1, 2], [0], [0]>} : vector<4x8x8xbf16>, vector<4x8x32xbf16>, vector<4x8x32xf32> -> vector<4x8x32xf32>
    "tpu.trace_stop"() : () -> ()
    %cst_134 = arith.constant dense<0.000000e+00> : vector<8x32xf32>
    %221 = vector.multi_reduction <add>, %220, %cst_134 [0] : vector<4x8x32xf32> to vector<8x32xf32>
    %222 = arith.addf %143, %221 : vector<8x32xf32>
    %c1_135 = arith.constant 1 : index
    %c0_136 = arith.constant 0 : index
    %c0_137 = arith.constant 0 : index
    %223 = vector.load %arg7[%c1_135, %c0_136, %c0_137] : memref<2x1x32xf32, #tpu.memory_space<vmem>>, vector<1x1x32xf32>
    %224 = vector.shape_cast %223 : vector<1x1x32xf32> to vector<1x32xf32>
    %225 = vector.broadcast %224 : vector<1x32xf32> to vector<8x32xf32>
    %226 = arith.addf %222, %225 : vector<8x32xf32>
    %c1_138 = arith.constant 1 : index
    %c0_139 = arith.constant 0 : index
    %c0_140 = arith.constant 0 : index
    %227 = vector.load %arg10[%c1_138, %c0_139, %c0_140] : memref<2x1x32xf32, #tpu.memory_space<vmem>>, vector<1x1x32xf32>
    %228 = vector.shape_cast %227 : vector<1x1x32xf32> to vector<1x32xf32>
    %c1_141 = arith.constant 1 : index
    %c0_142 = arith.constant 0 : index
    %c0_143 = arith.constant 0 : index
    %229 = vector.load %arg11[%c1_141, %c0_142, %c0_143] : memref<2x1x32xf32, #tpu.memory_space<vmem>>, vector<1x1x32xf32>
    %230 = vector.shape_cast %229 : vector<1x1x32xf32> to vector<1x32xf32>
    %cst_144 = arith.constant dense<0.000000e+00> : vector<8xf32>
    %231 = vector.multi_reduction <add>, %226, %cst_144 [1] : vector<8x32xf32> to vector<8xf32>
    %232 = vector.shape_cast %231 : vector<8xf32> to vector<8x1xf32>
    %cst_145 = arith.constant 3.200000e+01 : f32
    %233 = vector.broadcast %cst_145 : f32 to vector<8x1xf32>
    %234 = arith.divf %232, %233 : vector<8x1xf32>
    %235 = vector.broadcast %234 : vector<8x1xf32> to vector<8x32xf32>
    %236 = arith.subf %226, %235 : vector<8x32xf32>
    %237 = arith.mulf %236, %236 : vector<8x32xf32>
    %cst_146 = arith.constant dense<0.000000e+00> : vector<8xf32>
    %238 = vector.multi_reduction <add>, %237, %cst_146 [1] : vector<8x32xf32> to vector<8xf32>
    %239 = vector.shape_cast %238 : vector<8xf32> to vector<8x1xf32>
    %cst_147 = arith.constant 3.200000e+01 : f32
    %240 = vector.broadcast %cst_147 : f32 to vector<8x1xf32>
    %241 = arith.divf %239, %240 : vector<8x1xf32>
    %242 = vector.broadcast %234 : vector<8x1xf32> to vector<8x32xf32>
    %243 = arith.subf %226, %242 : vector<8x32xf32>
    %cst_148 = arith.constant 9.99999974E-6 : f32
    %244 = vector.broadcast %cst_148 : f32 to vector<8x1xf32>
    %245 = arith.addf %241, %244 : vector<8x1xf32>
    %246 = math.rsqrt %245 : vector<8x1xf32>
    %247 = vector.broadcast %246 : vector<8x1xf32> to vector<8x32xf32>
    %248 = arith.mulf %243, %247 : vector<8x32xf32>
    %249 = vector.broadcast %228 : vector<1x32xf32> to vector<8x32xf32>
    %250 = arith.mulf %248, %249 : vector<8x32xf32>
    %251 = vector.broadcast %230 : vector<1x32xf32> to vector<8x32xf32>
    %252 = arith.addf %250, %251 : vector<8x32xf32>
    %253 = arith.truncf %252 : vector<8x32xf32> to vector<8x32xbf16>
    %c1_149 = arith.constant 1 : index
    %c0_150 = arith.constant 0 : index
    %c0_151 = arith.constant 0 : index
    %254 = vector.load %arg12[%c1_149, %c0_150, %c0_151] : memref<2x32x128xbf16, #tpu.memory_space<vmem>>, vector<1x32x128xbf16>
    %255 = vector.shape_cast %254 : vector<1x32x128xbf16> to vector<32x128xbf16>
    %cst_152 = arith.constant dense<0.000000e+00> : vector<8x128xf32>
    %256 = tpu.matmul %253, %255, %cst_152 {dimension_numbers = #tpu.dot_dimension_numbers<[1], [0], [0], [1], [0, 0, 1, 1], [], []>} : vector<8x32xbf16>, vector<32x128xbf16>, vector<8x128xf32> -> vector<8x128xf32>
    %c1_153 = arith.constant 1 : index
    %c0_154 = arith.constant 0 : index
    %c0_155 = arith.constant 0 : index
    %257 = vector.load %arg13[%c1_153, %c0_154, %c0_155] : memref<2x1x128xf32, #tpu.memory_space<vmem>>, vector<1x1x128xf32>
    %258 = vector.shape_cast %257 : vector<1x1x128xf32> to vector<1x128xf32>
    %259 = vector.broadcast %258 : vector<1x128xf32> to vector<8x128xf32>
    %260 = arith.addf %256, %259 : vector<8x128xf32>
    %cst_156 = arith.constant 1.702000e+00 : f32
    %261 = vector.broadcast %cst_156 : f32 to vector<8x128xf32>
    %262 = arith.mulf %261, %260 : vector<8x128xf32>
    %263 = arith.negf %262 : vector<8x128xf32>
    %264 = math.exp %263 : vector<8x128xf32>
    %cst_157 = arith.constant 1.000000e+00 : f32
    %265 = vector.broadcast %cst_157 : f32 to vector<8x128xf32>
    %266 = arith.addf %265, %264 : vector<8x128xf32>
    %267 = arith.divf %265, %266 : vector<8x128xf32>
    %268 = arith.mulf %260, %267 : vector<8x128xf32>
    %269 = arith.truncf %268 : vector<8x128xf32> to vector<8x128xbf16>
    %c1_158 = arith.constant 1 : index
    %c0_159 = arith.constant 0 : index
    %c0_160 = arith.constant 0 : index
    %270 = vector.load %arg14[%c1_158, %c0_159, %c0_160] : memref<2x128x32xbf16, #tpu.memory_space<vmem>>, vector<1x128x32xbf16>
    %271 = vector.shape_cast %270 : vector<1x128x32xbf16> to vector<128x32xbf16>
    %cst_161 = arith.constant dense<0.000000e+00> : vector<8x32xf32>
    %272 = tpu.matmul %269, %271, %cst_161 {dimension_numbers = #tpu.dot_dimension_numbers<[1], [0], [0], [1], [0, 0, 1, 1], [], []>} : vector<8x128xbf16>, vector<128x32xbf16>, vector<8x32xf32> -> vector<8x32xf32>
    %c1_162 = arith.constant 1 : index
    %c0_163 = arith.constant 0 : index
    %c0_164 = arith.constant 0 : index
    %273 = vector.load %arg15[%c1_162, %c0_163, %c0_164] : memref<2x1x32xf32, #tpu.memory_space<vmem>>, vector<1x1x32xf32>
    %274 = vector.shape_cast %273 : vector<1x1x32xf32> to vector<1x32xf32>
    %275 = vector.broadcast %274 : vector<1x32xf32> to vector<8x32xf32>
    %276 = arith.addf %272, %275 : vector<8x32xf32>
    %277 = arith.addf %226, %276 : vector<8x32xf32>
    %c0_165 = arith.constant 0 : index
    %c0_166 = arith.constant 0 : index
    %278 = vector.load %arg20[%c0_165, %c0_166] : memref<8x32xf32, #tpu.memory_space<vmem>>, vector<8x32xf32>
    tpu.vector_store %arg20[%c0_165, %c0_166], %277 {strides = array<i32>} : memref<8x32xf32, #tpu.memory_space<vmem>>, vector<8x32xf32>,
    %279 = arith.index_cast %arg0 : i32 to index
    %280 = memref.load %arg1[%279] : memref<2xi32, #tpu.memory_space<smem>>
    %281 = arith.index_cast %280 : i32 to index
    %c0_167 = arith.constant 0 : index
    %282 = vector.load %arg20[%281, %c0_167] : memref<8x32xf32, #tpu.memory_space<vmem>>, vector<1x32xf32>
    %c0_168 = arith.constant 0 : index
    %c0_169 = arith.constant 0 : index
    %283 = vector.load %arg16[%c0_168, %c0_169] : memref<1x32xf32, #tpu.memory_space<vmem>>, vector<1x32xf32>
    %c0_170 = arith.constant 0 : index
    %c0_171 = arith.constant 0 : index
    %284 = vector.load %arg17[%c0_170, %c0_171] : memref<1x32xf32, #tpu.memory_space<vmem>>, vector<1x32xf32>
    %cst_172 = arith.constant dense<0.000000e+00> : vector<1xf32>
    %285 = vector.multi_reduction <add>, %282, %cst_172 [1] : vector<1x32xf32> to vector<1xf32>
    %286 = vector.shape_cast %285 : vector<1xf32> to vector<1x1xf32>
    %cst_173 = arith.constant 3.200000e+01 : f32
    %287 = vector.broadcast %cst_173 : f32 to vector<1x1xf32>
    %288 = arith.divf %286, %287 : vector<1x1xf32>
    %289 = vector.broadcast %288 : vector<1x1xf32> to vector<1x32xf32>
    %290 = arith.subf %282, %289 : vector<1x32xf32>
    %291 = arith.mulf %290, %290 : vector<1x32xf32>
    %cst_174 = arith.constant dense<0.000000e+00> : vector<1xf32>
    %292 = vector.multi_reduction <add>, %291, %cst_174 [1] : vector<1x32xf32> to vector<1xf32>
    %293 = vector.shape_cast %292 : vector<1xf32> to vector<1x1xf32>
    %cst_175 = arith.constant 3.200000e+01 : f32
    %294 = vector.broadcast %cst_175 : f32 to vector<1x1xf32>
    %295 = arith.divf %293, %294 : vector<1x1xf32>
    %296 = vector.broadcast %288 : vector<1x1xf32> to vector<1x32xf32>
    %297 = arith.subf %282, %296 : vector<1x32xf32>
    %cst_176 = arith.constant 9.99999974E-6 : f32
    %298 = vector.broadcast %cst_176 : f32 to vector<1x1xf32>
    %299 = arith.addf %295, %298 : vector<1x1xf32>
    %300 = math.rsqrt %299 : vector<1x1xf32>
    %301 = vector.broadcast %300 : vector<1x1xf32> to vector<1x32xf32>
    %302 = arith.mulf %297, %301 : vector<1x32xf32>
    %303 = arith.mulf %302, %283 : vector<1x32xf32>
    %304 = arith.addf %303, %284 : vector<1x32xf32>
    %305 = arith.truncf %304 : vector<1x32xf32> to vector<1x32xbf16>
    %c0_177 = arith.constant 0 : index
    %c0_178 = arith.constant 0 : index
    %306 = vector.load %arg18[%c0_177, %c0_178] : memref<32x16xbf16, #tpu.memory_space<vmem>>, vector<32x16xbf16>
    %cst_179 = arith.constant dense<0.000000e+00> : vector<1x16xf32>
    %307 = tpu.matmul %305, %306, %cst_179 {dimension_numbers = #tpu.dot_dimension_numbers<[1], [0], [0], [1], [0, 0, 1, 1], [], []>} : vector<1x32xbf16>, vector<32x16xbf16>, vector<1x16xf32> -> vector<1x16xf32>
    %308 = vector.shape_cast %307 : vector<1x16xf32> to vector<1x1x16xf32>
    %c0_180 = arith.constant 0 : index
    %c0_181 = arith.constant 0 : index
    %c0_182 = arith.constant 0 : index
    %309 = vector.load %arg19[%c0_180, %c0_181, %c0_182] : memref<1x1x16xf32, #tpu.memory_space<vmem>>, vector<1x1x16xf32>
    tpu.vector_store %arg19[%c0_180, %c0_181, %c0_182], %308 {strides = array<i32>} : memref<1x1x16xf32, #tpu.memory_space<vmem>>, vector<1x1x16xf32>,
    return
  }
  func.func @transform_0(%arg0: i32, %arg1: memref<2xi32, #tpu.memory_space<smem>>) -> (i32, i32, i32) {
    %c0_i32 = arith.constant 0 : i32
    %c0_i32_0 = arith.constant 0 : i32
    %c0_i32_1 = arith.constant 0 : i32
    return %arg0, %c0_i32, %c0_i32_0 : i32, i32, i32
  }
  func.func @transform_1(%arg0: i32, %arg1: memref<2xi32, #tpu.memory_space<smem>>) -> (i32, i32) {
    %c0_i32 = arith.constant 0 : i32
    %c0_i32_0 = arith.constant 0 : i32
    %c0_i32_1 = arith.constant 0 : i32
    return %c0_i32, %c0_i32_0 : i32, i32
  }
  func.func @transform_2(%arg0: i32, %arg1: memref<2xi32, #tpu.memory_space<smem>>) -> (i32, i32, i32, i32, i32) {
    %c0_i32 = arith.constant 0 : i32
    %c0_i32_0 = arith.constant 0 : i32
    %c0_i32_1 = arith.constant 0 : i32
    %c0_i32_2 = arith.constant 0 : i32
    %c0_i32_3 = arith.constant 0 : i32
    %c0_i32_4 = arith.constant 0 : i32
    return %c0_i32, %c0_i32_0, %c0_i32_1, %c0_i32_2, %c0_i32_3 : i32, i32, i32, i32, i32
  }
  func.func @transform_3(%arg0: i32, %arg1: memref<2xi32, #tpu.memory_space<smem>>) -> (i32, i32, i32, i32) {
    %c0_i32 = arith.constant 0 : i32
    %c0_i32_0 = arith.constant 0 : i32
    %c0_i32_1 = arith.constant 0 : i32
    %c0_i32_2 = arith.constant 0 : i32
    %c0_i32_3 = arith.constant 0 : i32
    return %c0_i32, %c0_i32_0, %c0_i32_1, %c0_i32_2 : i32, i32, i32, i32
  }
  func.func @transform_4(%arg0: i32, %arg1: memref<2xi32, #tpu.memory_space<smem>>) -> (i32, i32, i32, i32) {
    %c0_i32 = arith.constant 0 : i32
    %c0_i32_0 = arith.constant 0 : i32
    %c0_i32_1 = arith.constant 0 : i32
    %c0_i32_2 = arith.constant 0 : i32
    %c0_i32_3 = arith.constant 0 : i32
    return %c0_i32, %c0_i32_0, %c0_i32_1, %c0_i32_2 : i32, i32, i32, i32
  }
  func.func @transform_5(%arg0: i32, %arg1: memref<2xi32, #tpu.memory_space<smem>>) -> (i32, i32, i32) {
    %c0_i32 = arith.constant 0 : i32
    %c0_i32_0 = arith.constant 0 : i32
    %c0_i32_1 = arith.constant 0 : i32
    %c0_i32_2 = arith.constant 0 : i32
    return %c0_i32, %c0_i32_0, %c0_i32_1 : i32, i32, i32
  }
  func.func @transform_6(%arg0: i32, %arg1: memref<2xi32, #tpu.memory_space<smem>>) -> (i32, i32, i32) {
    %c0_i32 = arith.constant 0 : i32
    %c0_i32_0 = arith.constant 0 : i32
    %c0_i32_1 = arith.constant 0 : i32
    %c0_i32_2 = arith.constant 0 : i32
    return %c0_i32, %c0_i32_0, %c0_i32_1 : i32, i32, i32
  }
  func.func @transform_7(%arg0: i32, %arg1: memref<2xi32, #tpu.memory_space<smem>>) -> (i32, i32, i32) {
    %c0_i32 = arith.constant 0 : i32
    %c0_i32_0 = arith.constant 0 : i32
    %c0_i32_1 = arith.constant 0 : i32
    %c0_i32_2 = arith.constant 0 : i32
    return %c0_i32, %c0_i32_0, %c0_i32_1 : i32, i32, i32
  }
  func.func @transform_8(%arg0: i32, %arg1: memref<2xi32, #tpu.memory_space<smem>>) -> (i32, i32, i32) {
    %c0_i32 = arith.constant 0 : i32
    %c0_i32_0 = arith.constant 0 : i32
    %c0_i32_1 = arith.constant 0 : i32
    %c0_i32_2 = arith.constant 0 : i32
    return %c0_i32, %c0_i32_0, %c0_i32_1 : i32, i32, i32
  }
  func.func @transform_9(%arg0: i32, %arg1: memref<2xi32, #tpu.memory_space<smem>>) -> (i32, i32, i32) {
    %c0_i32 = arith.constant 0 : i32
    %c0_i32_0 = arith.constant 0 : i32
    %c0_i32_1 = arith.constant 0 : i32
    %c0_i32_2 = arith.constant 0 : i32
    return %c0_i32, %c0_i32_0, %c0_i32_1 : i32, i32, i32
  }
  func.func @transform_10(%arg0: i32, %arg1: memref<2xi32, #tpu.memory_space<smem>>) -> (i32, i32, i32) {
    %c0_i32 = arith.constant 0 : i32
    %c0_i32_0 = arith.constant 0 : i32
    %c0_i32_1 = arith.constant 0 : i32
    %c0_i32_2 = arith.constant 0 : i32
    return %c0_i32, %c0_i32_0, %c0_i32_1 : i32, i32, i32
  }
  func.func @transform_11(%arg0: i32, %arg1: memref<2xi32, #tpu.memory_space<smem>>) -> (i32, i32, i32) {
    %c0_i32 = arith.constant 0 : i32
    %c0_i32_0 = arith.constant 0 : i32
    %c0_i32_1 = arith.constant 0 : i32
    %c0_i32_2 = arith.constant 0 : i32
    return %c0_i32, %c0_i32_0, %c0_i32_1 : i32, i32, i32
  }
  func.func @transform_12(%arg0: i32, %arg1: memref<2xi32, #tpu.memory_space<smem>>) -> (i32, i32, i32) {
    %c0_i32 = arith.constant 0 : i32
    %c0_i32_0 = arith.constant 0 : i32
    %c0_i32_1 = arith.constant 0 : i32
    %c0_i32_2 = arith.constant 0 : i32
    return %c0_i32, %c0_i32_0, %c0_i32_1 : i32, i32, i32
  }
  func.func @transform_13(%arg0: i32, %arg1: memref<2xi32, #tpu.memory_space<smem>>) -> (i32, i32, i32) {
    %c0_i32 = arith.constant 0 : i32
    %c0_i32_0 = arith.constant 0 : i32
    %c0_i32_1 = arith.constant 0 : i32
    %c0_i32_2 = arith.constant 0 : i32
    return %c0_i32, %c0_i32_0, %c0_i32_1 : i32, i32, i32
  }
  func.func @transform_14(%arg0: i32, %arg1: memref<2xi32, #tpu.memory_space<smem>>) -> (i32, i32) {
    %c0_i32 = arith.constant 0 : i32
    %c0_i32_0 = arith.constant 0 : i32
    %c0_i32_1 = arith.constant 0 : i32
    return %c0_i32, %c0_i32_0 : i32, i32
  }
  func.func @transform_15(%arg0: i32, %arg1: memref<2xi32, #tpu.memory_space<smem>>) -> (i32, i32) {
    %c0_i32 = arith.constant 0 : i32
    %c0_i32_0 = arith.constant 0 : i32
    %c0_i32_1 = arith.constant 0 : i32
    return %c0_i32, %c0_i32_0 : i32, i32
  }
  func.func @transform_16(%arg0: i32, %arg1: memref<2xi32, #tpu.memory_space<smem>>) -> (i32, i32) {
    %c0_i32 = arith.constant 0 : i32
    %c0_i32_0 = arith.constant 0 : i32
    %c0_i32_1 = arith.constant 0 : i32
    return %c0_i32, %c0_i32_0 : i32, i32
  }
  func.func @transform_17(%arg0: i32, %arg1: memref<2xi32, #tpu.memory_space<smem>>) -> (i32, i32, i32) {
    %c0_i32 = arith.constant 0 : i32
    %c0_i32_0 = arith.constant 0 : i32
    %c0_i32_1 = arith.constant 0 : i32
    return %arg0, %c0_i32, %c0_i32_0 : i32, i32, i32
  }
}

</mosaic_0001>

<bundles_post_ra>
// kernel: tpu_custom_call.1
= control target key start
LH: loop header
LB: loop body
LE: loop exit
PB: predicated region body
PF: predicated region fallthrough
CT: control target
= control target key end

     0   :  { %s3249_s30 = smov [#allocation4]   ;;  %s3919_s0 = inlined_call_operand.vmem [shape: s32[2], index: 0, kind: input, shape index: {}]   ;;  %s3920_s1 = inlined_call_operand.vmem [shape: f32[2,8,32], index: 1, kind: input, shape index: {}]   ;;  %s3921_s2 = inlined_call_operand.vmem [shape: f32[8,32], index: 2, kind: input, shape index: {}]   ;;  %s3922_s3 = inlined_call_operand.vmem [shape: bf16[2,3,4,32,8], index: 3, kind: input, shape index: {}]   ;;  %s3923_s4 = inlined_call_operand.vmem [shape: f32[2,3,4,8], index: 4, kind: input, shape index: {}]   ;;  %s3924_s5 = inlined_call_operand.vmem [shape: bf16[2,4,8,32], index: 5, kind: input, shape index: {}]   ;;  %s3925_s6 = inlined_call_operand.vmem [shape: f32[2,1,32], index: 6, kind: input, shape index: {}]   ;;  %s3926_s7 = inlined_call_operand.vmem [shape: f32[2,1,32], index: 7, kind: input, shape index: {}]   ;;  %s3927_s8 = inlined_call_operand.vmem [shape: f32[2,1,32], index: 8, kind: input, shape index: {}]   ;;  %s3928_s9 = inlined_call_operand.vmem [shape: f32[2,1,32], index: 9, kind: input, shape index: {}]   ;;  %s3929_s10 = inlined_call_operand.vmem [shape: f32[2,1,32], index: 10, kind: input, shape index: {}]   ;;  %s3930_s11 = inlined_call_operand.vmem [shape: bf16[2,32,128], index: 11, kind: input, shape index: {}]   ;;  %s3931_s12 = inlined_call_operand.vmem [shape: f32[2,1,128], index: 12, kind: input, shape index: {}]   ;;  %s3932_s13 = inlined_call_operand.vmem [shape: bf16[2,128,32], index: 13, kind: input, shape index: {}]   ;;  %s3933_s14 = inlined_call_operand.vmem [shape: f32[2,1,32], index: 14, kind: input, shape index: {}]   ;;  %s3934_s15 = inlined_call_operand.vmem [shape: f32[1,32], index: 15, kind: input, shape index: {}]   ;;  %s3935_s16 = inlined_call_operand.vmem [shape: f32[1,32], index: 16, kind: input, shape index: {}]   ;;  %s3936_s17 = inlined_call_operand.vmem [shape: bf16[32,16], index: 17, kind: input, shape index: {}]   ;;  %s3937_s18 = inlined_call_operand.hbm [shape: f32[2,1,16], index: 18, kind: output, shape index: {}]  }
   0x1   :  { %3944 = sst [smem:[#allocation14_spill]] %s3919_s0 }
   0x2   :  { %3945 = sst [smem:[#allocation15_spill]] %s3920_s1 }
   0x3   :  { %3946 = sst [smem:[#allocation16_spill]] %s3921_s2 }
   0x4   :  { %3947 = sst [smem:[#allocation17_spill]] %s3922_s3 }
   0x5   :  { %3948 = sst [smem:[#allocation18_spill]] %s3931_s12 }
   0x6   :  { %s3949_s29 = sld [smem:[#allocation14_spill]] }
   0xc   :  { %s24_s12 = sshll.u32 %s3949_s29, 4  ;;  %s25_s12 = int_to_ptr.vmem [resolvable:$true] %s24_s12 }
   0xd   :  { %27 = dma.vmem_to_smem %s25_s12, 16, %s3249_s30, [#allocation3] }
   0xe   :  { %3227 = dma.done.wait [#allocation3], 16 }
   0xf   :  { %3228 = vsyncadd [#allocation3], 4294967280 }
  0x10   :  { %30 = sfence }
  0x11   :  { %31 = vsyncpa [#allocation6], 0 }
  0x12   :  { %33 = vsyncpa [#allocation6 + $0x1], 0  ;;  %s3350_s0 = smov 0   ;;  %s3352_s19 = smov 0  }
  0x13   :  { %s3354_s1 = smov 0   ;;  %s3356_s20 = smov 0  }
  0x14 LB: > { %3950 = sst [smem:[#allocation9_spill]] %s3235_s0  ;;  %s3371_s12 = sadd.s32 4294967295, %s3247_s20   ;;  %s3247_s20 = sphi %s3356_s20, %s3964_s20   ;;  %s3243_s1 = sphi %s3354_s1, %s3966_s1   ;;  %s3239_s19 = sphi %s3352_s19, %s3968_s19   ;;  %s3235_s0 = sphi %s3350_s0, %s3967_s0  }
  0x15   : > { %3951 = sst [smem:[#allocation10_spill]] %s3243_s1  ;;  %s2537_s21 = sadd.s32 4294967294, %s3247_s20  }
  0x16   : > { %s3375_s22 = sadd.s32 1, %s3247_s20   ;;  %s408_s2 = sadd.s32 1, %s3243_s1 }
  0x17   : > { %3952 = sst [smem:[#allocation11_spill]] %s3375_s22  ;;  %s405_s23 = ssub.s32 %s3247_s20, %s3375_s22 }
  0x18   : > { %p418_p0 = scmp.ne.s32.totalorder %s3243_s1, %s3239_s19  ;;  %p406_p1 = scmp.eq.s32.totalorder %s405_s23, 0 }
  0x19   : > { %p419_p2 = scmp.eq.s32.totalorder %s3371_s12, 1  ;;  %p424_p3 = scmp.ne.s32.totalorder %s3239_s19, %s3235_s0 }
  0x1a   : > { %p425_p4 = scmp.eq.s32.totalorder %s2537_s21, 1  ;;  %p2540_p7 = scmp.ge.s32.totalorder %s3247_s20, 1 }
  0x1b   : > { %s3386_s24 = scalar_select %p406_p1, %s3243_s1, %s408_s2  }
  0x1c   : > { %p3388_p5 = por %p419_p2, %p418_p0  ;;  %p3392_p6 = por %p425_p4, %p424_p3 }
  0x1d   : > { %3953 = sst [smem:[#allocation12_spill]] %s3386_s24  ;;  %p498_p8 = scmp.lt.s32.totalorder %s3247_s20, 3 }
  0x1e   : > { %s3955_s26 = scalar_select %p3392_p6, 1, 0 }
  0x1f   : > { %p499_p9 = pnand %p2540_p7, %p498_p8 }
  0x20   : > { %3956 = sst [smem:[#allocation13_spill]] %s3955_s26  ;;  %p548_p10 = scmp.lt.s32.totalorder (!%p499_p9), %s3371_s12, 1 }
  0x21   : > { %502 = sbr.rel (%p499_p9) target bundleno = 3813 (0xee5), region = 88  ;;  %s3957_s21 = sld [smem:[#allocation16_spill]] (!%p499_p9) }
  0x22   : > { %s3958_s24 = sld [smem:[#allocation15_spill]] (!%p499_p9)  ;;  %s2477_s26 = scalar_lea.hbm (!%p499_p9), %s3937_s18, %s3371_s12 }
  0x23   : > { %s3959_s3 = sld [smem:[#allocation17_spill]] (!%p499_p9) }
  0x26   : > { %s549_s27 = scalar_select %p548_p10, %s3371_s12, 1  ;;  %vm564_vm0 = vcmask 261120   ;;  %v3250_v4 = vmov 32.0   ;;  %v3105_v41 = vld [vmem:[%s3926_s7] ss:$0 sm:$0xff]  ;;  %vm1005_vm5 = vcmask 64512  }
  0x27   : > { %v554_v0 = vld [vmem:[%s3957_s21] sm:$0xff]  ;;  %3119 = vrcp.f32 %v3250_v4  ;;  %vm1137_vm6 = vcmask 1043456   ;;  %s2481_s21 = sshll.u32 %s2477_s26, 4  ;;  %s2482_s21 = int_to_ptr.hbm [resolvable:$true] %s2481_s21 }
  0x28   : > { %s2541_s28 = sshll.u32 %s549_s27, 3  ;;  %v3106_v43 = vld [vmem:[%s3927_s8] ss:$0 sm:$0xff]  ;;  %v3509_v56 = vld [vmem:[%s3923_s4 + $0x4] sm:$0xf]  ;;  %s546_s27 = sand.u32 1, %s3239_s19  }
  0x29   : > { %s551_s1 = scalar_lea.vmem %s3958_s24, %s2541_s28  ;;  %v2994_v16 = vld [vmem:[%s3959_s3 + $0x8] sm:$0xff]  ;;  %v2996_v17 = vld [vmem:[%s3959_s3 + $0x18] sm:$0xff]  ;;  %v2993_v20 = vld [vmem:[%s3959_s3] sm:$0xff]  ;;  %v758_v57 = vperm.slane %v3509_v56, 0  ;;  %s2403_s28 = sld [smem:[#allocation4 + %s3371_s12]] }
  0x2a   : > { %v553_v1 = vld [vmem:[%s551_s1] sm:$0xff]  ;;  %v3000_v18 = vld [vmem:[%s3959_s3 + $0x38] sm:$0xff]  ;;  %v3002_v19 = vld [vmem:[%s3959_s3 + $0x48] sm:$0xff]  ;;  %653 = vmatpush.bf16.msra.mxu2 %v2994_v16  ;;  %678 = vmatpush.bf16.msra.mxu1 %v2996_v17  ;;  %v757_v17 = vrot.slane %v3509_v56, 3  ;;  %s3960_s1 = sld [smem:[#allocation18_spill]]  ;;  %s547_s29 = scalar_lea.vmem [#allocation5], %s546_s27 }
  0x2b   : > { %v3406_v2 = vadd.f32 %v554_v0, %v553_v1  ;;  %728 = vmatpush.bf16.msra.mxu3 %v3000_v18  ;;  %784 = vmatpush.bf16.msra.mxu0 %v3002_v19  ;;  %v2995_v21 = vld [vmem:[%s3959_s3 + $0x10] sm:$0xff]  ;;  %v3001_v23 = vld [vmem:[%s3959_s3 + $0x40] sm:$0xff]  ;;  %v2998_v25 = vld [vmem:[%s3959_s3 + $0x28] sm:$0xff]  ;;  %s2479_s30 = sshll.u32 %s547_s29, 4  ;;  %s2469_s22 = scalar_lea.sflag [#allocation6], %s546_s27  ;;  %s2480_s30 = int_to_ptr.vmem [resolvable:$true] %s2479_s30 }
  0x2c   : > { %v2999_v22 = vld [vmem:[%s3959_s3 + $0x30] sm:$0xff]  ;;  %v3004_v26 = vld [vmem:[%s3959_s3 + $0x58] sm:$0xff]  ;;  %v3010_v29 = vld [vmem:[%s3959_s3 + $0x88] sm:$0xff]  ;;  %s3197_s2 = sshra.s32 %s2482_s21, 4  ;;  %s3203_s12 = scalar_lea.hbm %s3937_s18, 2  ;;  %s3198_s2 = int_to_ptr.hbm [resolvable:$true] %s3197_s2 }
  0x2d   : > { %v565_v3 = vsel %vm564_vm0, %v3406_v2, 0.0  ;;  %v3120_v5 = vpop.eup %3119  ;;  %v3008_v27 = vld [vmem:[%s3959_s3 + $0x78] sm:$0xff]  ;;  %v2997_v30 = vld [vmem:[%s3959_s3 + $0x20] sm:$0xff]  ;;  %v3003_v31 = vld [vmem:[%s3959_s3 + $0x50] sm:$0xff]  ;;  %s3199_s23 = scalar_lea.hbm %s3198_s2, 1  ;;  %p3204_p0 = scmp.lt.s32.totalorder %s3198_s2, %s3937_s18 }
  0x2e   : > { %566 = vadd.xlane.f32.xlu0 %v565_v3  ;;  %v569_v6 = vmul.f32 32.0, %v3120_v5  ;;  %vm573_vm1 = vweird.f32 %v3120_v5  ;;  %654 = vmatpush.bf16.msra.mxu2 %v2993_v20  ;;  %v3007_v33 = vld [vmem:[%s3959_s3 + $0x70] sm:$0xff]  ;;  %v3009_v34 = vld [vmem:[%s3959_s3 + $0x80] sm:$0xff]  ;;  %v3006_v48 = vld [vmem:[%s3959_s3 + $0x68] sm:$0xff]  ;;  %p3200_p11 = scmp.ne.s32.totalorder %s3198_s2, %s3199_s23  ;;  %p3205_p1 = scmp.lt.s32.totalorder %s3203_s12, %s3199_s23 }
  0x2f   : > { %679 = vmatpush.bf16.msra.mxu1 %v2995_v21  ;;  %729 = vmatpush.bf16.msra.mxu3 %v2999_v22  ;;  %v3012_v49 = vld [vmem:[%s3959_s3 + $0x98] sm:$0xff]  ;;  %v3005_v51 = vld [vmem:[%s3959_s3 + $0x60] sm:$0xff]  ;;  %v3011_v52 = vld [vmem:[%s3959_s3 + $0x90] sm:$0xff]  ;;  %s2404_s0 = scalar_lea.vmem [#allocation2], %s2403_s28 }
  0x30   : > { %v570_v7 = vsub.f32 1.0, %v569_v6  ;;  %785 = vmatpush.bf16.msra.mxu0 %v3001_v23  ;;  %v3016_v50 = vld [vmem:[%s3959_s3 + $0xb8] sm:$0xff]  ;;  %v3015_v53 = vld [vmem:[%s3959_s3 + $0xb0] sm:$0xff]  ;;  %v3014_v54 = vld [vmem:[%s3959_s3 + $0xa8] sm:$0xff]  ;;  %s3961_s24 = smov %s3960_s1  ;;  %p3201_p12 = pnand %p3200_p11, %p3388_p5 }
  0x31   : > { %v3013_v55 = vld [vmem:[%s3959_s3 + $0xa0] sm:$0xff]  ;;  %p3206_p2 = por %p3205_p1, %p3204_p0 }
  0x32   : > { %v571_v8 = vmul.f32 %v3120_v5, %v570_v7  ;;  %703 = vmatpush.bf16.msrb.mxu2 %v2998_v25  ;;  %v3515_v61 = vld [vmem:[%s3923_s4] sm:$0xf]  ;;  %v755_v7 = vrot.slane %v3509_v56, 1  ;;  %p3202_p13 = pneg %p3201_p12 }
  0x33   : > { %809 = vmatpush.bf16.msrb.mxu1 %v3004_v26  ;;  %859 = vmatpush.bf16.msrb.mxu3 %v3008_v27  ;;  %v624_v63 = vperm.slane %v3515_v61, 0  ;;  %v623_v26 = vrot.slane %v3515_v61, 3 }
  0x34   : > { %v572_v9 = vadd.f32 %v3120_v5, %v571_v8  ;;  %915 = vmatpush.bf16.msrb.mxu0 %v3010_v29  ;;  %v3523_v8 = vld [vmem:[%s3923_s4 + $0x8] sm:$0xf]  ;;  %p3207_p3 = pnand %p3206_p2, %p3202_p13 }
  0x36   : > { %v3410_v10 = vsel %vm573_vm1, %v3120_v5, %v572_v9  ;;  %704 = vmatpush.bf16.msrb.mxu2 %v2997_v30 }
  0x37   : > { %810 = vmatpush.bf16.msrb.mxu1 %v3003_v31  ;;  %860 = vmatpush.bf16.msrb.mxu3 %v3007_v33 }
  0x38   : > { %916 = vmatpush.bf16.msrb.mxu0 %v3009_v34  ;;  %v886_v34 = vrot.slane %v3523_v8, 1 }
  0xa1   : > { %v567_v11 = vpop.xlane.xlu0 %566 }
  0xa2   : > { %v575_v12 = vmul.f32 %v3410_v10, %v567_v11  ;;  %v759_v11 = vperm.slane %v755_v7, 0 }
  0xa4   : > { %v576_v13 = vsub.f32 %v3406_v2, %v575_v12 }
  0xa6   : > { %v577_v14 = vmul.f32 %v576_v13, %v576_v13 }
  0xa8   : > { %v578_v15 = vsel %vm564_vm0, %v577_v14, 0.0  ;;  %v621_v14 = vrot.slane %v3515_v61, 1 }
  0xa9   : > { %579 = vadd.xlane.f32.xlu0 %v578_v15 }
  0xaa   : > { %v625_v21 = vperm.slane %v621_v14, 0 }
 0x11c   : > { %v580_v24 = vpop.xlane.xlu0 %579 }
 0x11d   : > { %v581_v28 = vmul.f32 %v580_v24, %v3410_v10  ;;  %v761_v24 = vperm.slane %v757_v17, 0 }
 0x11f   : > { %v582_v32 = vadd.f32 1e-05, %v581_v28 }
 0x121   : > { %3121 = vrsqrt.f32 %v582_v32  ;;  %vm589_vm3 = vweird.f32 %v582_v32 }
 0x127   : > { %v3122_v35 = vpop.eup %3121 }
 0x128   : > { %v584_v36 = vmul.f32 %v3122_v35, %v582_v32  ;;  %vm590_vm2 = vweird.f32 %v3122_v35 }
 0x129   : > { %vm591_vm4 = vmor %vm589_vm3, %vm590_vm2 }
 0x12a   : > { %v585_v37 = vmul.f32 %v3122_v35, %v584_v36 }
 0x12c   : > { %v586_v38 = vmul.f32 0.5, %v585_v37 }
 0x12e   : > { %v587_v39 = vsub.f32 1.5, %v586_v38 }
 0x130   : > { %v588_v40 = vmul.f32 %v3122_v35, %v587_v39  ;;  %v890_v39 = vperm.slane %v886_v34, 0 }
 0x132   : > { %v592_v42 = vsel %vm591_vm4, %v3122_v35, %v588_v40  ;;  %v627_v35 = vperm.slane %v623_v26, 0 }
 0x133   : > { %v593_v44 = vmul.f32 %v592_v42, %v576_v13  ;;  %v889_v13 = vperm.slane %v3523_v8, 0 }
 0x135   : > { %v597_v45 = vmul.f32 %v3105_v41, %v593_v44 }
 0x137   : > { %v601_v46 = vadd.f32 %v3106_v43, %v597_v45  ;;  %v756_v43 = vrot.slane %v3509_v56, 2  ;;  %v888_v45 = vrot.slane %v3523_v8, 3 }
 0x139   : > { %v602_v47 = vpack.c.bf16 %v601_v46, %v601_v46 }
 0x13b   : > { %2550 = vmatmul.msk.bf16.vlgmr.msra.gmra.mxu2 %vm564_vm0, %v602_v47  ;;  %2559 = vmatmul.msk.bf16.vlgmr.msra.gmra.mxu1 %vm564_vm0, %v602_v47 }
 0x13c   : > { %2577 = vmatmul.msk.bf16.vlgmr.msra.gmra.mxu3 %vm564_vm0, %v602_v47  ;;  %2603 = vmatmul.msk.bf16.vlgmr.msra.gmra.mxu0 %vm564_vm0, %v602_v47 }
 0x13d   : > { %834 = vmatpush.bf16.msra.mxu2 %v3006_v48  ;;  %940 = vmatpush.bf16.msra.mxu1 %v3012_v49  ;;  %v760_v49 = vperm.slane %v756_v43, 0 }
 0x13e   : > { %990 = vmatpush.bf16.msra.mxu3 %v3016_v50  ;;  %v892_v50 = vperm.slane %v888_v45, 0 }
 0x141   : > { %835 = vmatpush.bf16.msra.mxu2 %v3005_v51  ;;  %941 = vmatpush.bf16.msra.mxu1 %v3011_v52  ;;  %v622_v51 = vrot.slane %v3515_v61, 2 }
 0x142   : > { %991 = vmatpush.bf16.msra.mxu3 %v3015_v53 }
 0x14b   : > { %2568 = vmatmul.msk.bf16.vlgmr.msrb.gmra.mxu2 %vm564_vm0, %v602_v47  ;;  %2612 = vmatmul.msk.bf16.vlgmr.msrb.gmra.mxu1 %vm564_vm0, %v602_v47 }
 0x14c   : > { %2630 = vmatmul.msk.bf16.vlgmr.msrb.gmra.mxu3 %vm564_vm0, %v602_v47  ;;  %2656 = vmatmul.msk.bf16.vlgmr.msrb.gmra.mxu0 %vm564_vm0, %v602_v47 }
 0x14d   : > { %965 = vmatpush.bf16.msrb.mxu2 %v3014_v54 }
 0x151   : > { %966 = vmatpush.bf16.msrb.mxu2 %v3013_v55 }
 0x15b   : > { %2621 = vmatmul.msk.bf16.vlgmr.msra.gmra.mxu2 %vm564_vm0, %v602_v47  ;;  %2665 = vmatmul.msk.bf16.vlgmr.msra.gmra.mxu1 %vm564_vm0, %v602_v47 }
 0x15c   : > { %2683 = vmatmul.msk.bf16.vlgmr.msra.gmra.mxu3 %vm564_vm0, %v602_v47 }
 0x16b   : > { %2674 = vmatmul.msk.bf16.vlgmr.msrb.gmra.mxu2 %vm564_vm0, %v602_v47 }
 0x1b8   : > { %v681_v58 = vpop.f32.mrf.mxu1 }
 0x1b9   : > { %v787_v59 = vpop.f32.mrf.mxu0  ;;  %v682_v29 = vadd.f32 %v681_v58, %v625_v21  ;;  %v626_v58 = vperm.slane %v622_v51, 0 }
 0x1ba   : > { %v788_v60 = vadd.f32 %v787_v59, %v758_v57 }
 0x1bb   : > { %v998_v37 = vpack.c.bf16 %v682_v29, %v682_v29 }
 0x1bc   : > { %v1001_v62 = vpack.c.bf16 %v788_v60, %v788_v60 }
 0x1be   : > { %v1010_v0 = vsel %vm1005_vm5, %v1001_v62, 0  ;;  %v656_v1 = vpop.f32.mrf.mxu2 }
 0x1bf   : > { %v731_v3 = vpop.f32.mrf.mxu3  ;;  %1019 = vmatpush.bf16.xpose.msra.mxu0 %v1010_v0  ;;  %v657_v4 = vadd.f32 %v656_v1, %v624_v63 }
 0x1c0   : > { %v683_v5 = vpop.f32.mrf.mxu1  ;;  %v732_v40 = vadd.f32 %v731_v3, %v627_v35  ;;  %v887_v3 = vrot.slane %v3523_v8, 2 }
 0x1c1   : > { %v789_v6 = vpop.f32.mrf.mxu0  ;;  %v997_v9 = vpack.c.bf16 %v657_v4, %v657_v4 }
 0x1c2   : > { %v1000_v47 = vpack.c.bf16 %v732_v40, %v732_v40  ;;  %v891_v5 = vperm.slane %v887_v3, 0 }
 0x1c6   : > { %2684 = vmatmul.msk.bf16.vlgmr.msra.gmra.mxu0 %vm1005_vm5, %v997_v9  ;;  %v658_v12 = vpop.f32.mrf.mxu2 }
 0x1c7   : > { %v733_v15 = vpop.f32.mrf.mxu3 }
 0x1c8   : > { %v812_v16 = vpop.f32.mrf.mxu1 }
 0x1c9   : > { %v813_v18 = vadd.f32 %v812_v16, %v759_v11  ;;  %v918_v19 = vpop.f32.mrf.mxu0  ;;  %v3251_v16 = vmov 0.0  }
 0x1ca   : > { %v919_v20 = vadd.f32 %v918_v19, %v889_v13  ;;  %v556_v13 = vlaneseq }
 0x1cb   : > { %v1002_v22 = vpack.c.bf16 %v813_v18, %v813_v18 }
 0x1cc   : > { %v1130_v23 = vpack.c.bf16 %v919_v20, %v919_v20  ;;  %v557_v14 = vshrl.u32 %v556_v13, 7  ;;  %v559_v15 = vand.u32 127, %v556_v13  ;;  %v1217_v13 = vld [vmem:[%s3924_s5 + $0x8] sm:$0xf] }
 0x1cd   : > { %v1029_v25 = vsel %vm1005_vm5, %v1002_v22, 0 }
 0x1ce   : > { %v1139_v27 = vsel %vm1137_vm6, %v1130_v23, 0  ;;  %v706_v28 = vpop.f32.mrf.mxu2  ;;  %1038 = vmatpush.bf16.xpose.msrb.mxu1 %v1029_v25  ;;  %vm560_vm7 = vcmp.gt.s32.totalorder %v559_v15, %v557_v14  ;;  %v1261_v14 = vsel %vm1137_vm6, %v1217_v13, 0  ;;  %v1216_v15 = vld [vmem:[%s3924_s5 + $0x4] sm:$0xf]  ;;  %v3021_v13 = vld [vmem:[%s3932_s13 + $0x10] sm:$0xff] }
 0x1cf   : > { %v862_v30 = vpop.f32.mrf.mxu3  ;;  %1148 = vmatpush.bf16.msrb.mxu0 %v1139_v27  ;;  %v707_v0 = vadd.f32 %v706_v28, %v626_v58  ;;  %v3545_v17 = vsel %vm560_vm7, -1e+30, %v3251_v16  ;;  %v1242_v16 = vsel %vm1137_vm6, %v1216_v15, 0  ;;  %v3020_v15 = vld [vmem:[%s3932_s13 + $0x8] sm:$0xff] }
 0x1d0   : > { %v863_v31 = vadd.f32 %v862_v30, %v761_v24  ;;  %v814_v32 = vpop.f32.mrf.mxu1 }
 0x1d1   : > { %v920_v33 = vpop.f32.mrf.mxu0  ;;  %v999_v4 = vpack.c.bf16 %v707_v0, %v707_v0 }
 0x1d2   : > { %v1004_v36 = vpack.c.bf16 %v863_v31, %v863_v31 }
 0x1d4   : > { %v1067_v38 = vsel %vm1005_vm5, %v1004_v36, 0 }
 0x1d5   : > { %1076 = vmatpush.bf16.xpose.msrb.mxu3 %v1067_v38  ;;  %2685 = vmatmul.msk.bf16.vlgmr.msrb.gmra.mxu1 %vm1005_vm5, %v998_v37 }
 0x1d6   : > { %v708_v41 = vpop.f32.mrf.mxu2 }
 0x1d7   : > { %v864_v42 = vpop.f32.mrf.mxu3 }
 0x1d8   : > { %v943_v44 = vpop.f32.mrf.mxu1 }
 0x1d9   : > { %v944_v46 = vadd.f32 %v943_v44, %v890_v39 }
 0x1db   : > { %v1131_v48 = vpack.c.bf16 %v944_v46, %v944_v46 }
 0x1dc   : > { %2687 = vmatmul.msk.bf16.vlgmr.msrb.gmra.mxu3 %vm1005_vm5, %v1000_v47 }
 0x1dd   : > { %v1158_v52 = vsel %vm1137_vm6, %v1131_v48, 0 }
 0x1de   : > { %v837_v53 = vpop.f32.mrf.mxu2  ;;  %1167 = vmatpush.bf16.msra.mxu1 %v1158_v52 }
 0x1df   : > { %v838_v54 = vadd.f32 %v837_v53, %v760_v49  ;;  %v993_v55 = vpop.f32.mrf.mxu3 }
 0x1e0   : > { %v994_v57 = vadd.f32 %v993_v55, %v892_v50  ;;  %v945_v56 = vpop.f32.mrf.mxu1 }
 0x1e1   : > { %v1003_v59 = vpack.c.bf16 %v838_v54, %v838_v54 }
 0x1e2   : > { %v1133_v60 = vpack.c.bf16 %v994_v57, %v994_v57  ;;  %1251 = vmatpush.bf16.msrb.mxu1 %v1242_v16 }
 0x1e3   : > { %v1048_v62 = vsel %vm1005_vm5, %v1003_v59, 0 }
 0x1e4   : > { %v1196_v63 = vsel %vm1137_vm6, %v1133_v60, 0  ;;  %1057 = vmatpush.bf16.xpose.msra.mxu2 %v1048_v62 }
 0x1e5   : > { %1205 = vmatpush.bf16.msra.mxu3 %v1196_v63 }
 0x1e6   : > { %v839_v1 = vpop.f32.mrf.mxu2 }
 0x1e7   : > { %v995_v61 = vpop.f32.mrf.mxu3 }
 0x1eb   : > { %2686 = vmatmul.msk.bf16.vlgmr.msra.gmra.mxu2 %vm1005_vm5, %v999_v4 }
 0x1ee   : > { %v968_v6 = vpop.f32.mrf.mxu2 }
 0x1ef   : > { %v969_v7 = vadd.f32 %v968_v6, %v891_v5  ;;  %v1215_v6 = vld [vmem:[%s3924_s5] sm:$0xf] }
 0x1f1   : > { %v1132_v9 = vpack.c.bf16 %v969_v7, %v969_v7  ;;  %v1223_v7 = vsel %vm1137_vm6, %v1215_v6, 0  ;;  %v3026_v6 = vld [vmem:[%s3932_s13 + $0x38] sm:$0xff] }
 0x1f2   : > { %1232 = vmatpush.bf16.msra.mxu0 %v1223_v7  ;;  %v3025_v7 = vld [vmem:[%s3932_s13 + $0x30] sm:$0xff] }
 0x1f3   : > { %v1177_v11 = vsel %vm1137_vm6, %v1132_v9, 0 }
 0x1f4   : > { %1186 = vmatpush.bf16.msrb.mxu2 %v1177_v11 }
 0x1f6   : > { %v970_v12 = vpop.f32.mrf.mxu2 }
 0x1f8   : > { %1270 = vmatpush.bf16.msra.mxu2 %v1261_v14  ;;  %v3110_v14 = vld [vmem:[%s3960_s1] ss:$0 sm:$0xff] }
 0x243   : > { %v1021_v18 = vpop.f32.mrf.mxu0 }
 0x244   : > { %v1022_v8 = vadd.f32 %v1021_v18, %v3545_v17  ;;  %v1218_v18 = vld [vmem:[%s3924_s5 + $0xc] sm:$0xf] }
 0x246   : > { %v1082_v19 = vsel %vm1005_vm5, %v1022_v8, -inf }
 0x247   : > { %1083 = vmax.xlane.f32.xlu2 %v1082_v19 }
 0x24b   : > { %v1023_v20 = vpop.f32.mrf.mxu0 }
 0x252   : > { %v1040_v21 = vpop.f32.mrf.mxu1 }
 0x253   : > { %v1041_v22 = vadd.f32 %v1040_v21, %v3545_v17 }
 0x255   : > { %v1085_v23 = vsel %vm1005_vm5, %v1041_v22, -inf }
 0x256   : > { %1086 = vmax.xlane.f32.xlu2 %v1085_v23 }
 0x25a   : > { %v1042_v24 = vpop.f32.mrf.mxu1 }
 0x25f   : > { %v1078_v25 = vpop.f32.mrf.mxu3 }
 0x260   : > { %v1079_v30 = vadd.f32 %v1078_v25, %v3545_v17 }
 0x262   : > { %v1091_v32 = vsel %vm1005_vm5, %v1079_v30, -inf }
 0x267   : > { %v1080_v26 = vpop.f32.mrf.mxu3 }
 0x26e   : > { %v1059_v27 = vpop.f32.mrf.mxu2 }
 0x26f   : > { %v1060_v28 = vadd.f32 %v1059_v27, %v3545_v17 }
 0x271   : > { %v1088_v29 = vsel %vm1005_vm5, %v1060_v28, -inf }
 0x272   : > { %1089 = vmax.xlane.f32.xlu1 %v1088_v29 }
 0x276   : > { %v1061_v31 = vpop.f32.mrf.mxu2 }
 0x27a   : > { %1092 = vmax.xlane.f32.xlu1 %v1091_v32 }
 0x2ba   : > { %v1084_v33 = vpop.xlane.xlu2 %1083 }
 0x2bb   : > { %v1094_v34 = vsub.f32 %v1022_v8, %v1084_v33  ;;  %v1280_v8 = vsel %vm1137_vm6, %v1218_v18, 0 }
 0x2bc   : > { %1289 = vmatpush.bf16.msrb.mxu3 %v1280_v8  ;;  %v3019_v8 = vld [vmem:[%s3932_s13] sm:$0xff] }
 0x2bd   : > { %v1098_v35 = vmul.f32 1.442695, %v1094_v34 }
 0x2bf   : > { %3123 = vpow2.f32 %v1098_v35 }
 0x2c5   : > { %v3124_v36 = vpop.eup %3123 }
 0x2c6   : > { %v1106_v37 = vsel %vm1005_vm5, %v3124_v36, 0.0 }
 0x2c7   : > { %1107 = vadd.xlane.f32.xlu2 %v1106_v37 }
 0x2c9   : > { %v1087_v38 = vpop.xlane.xlu2 %1086 }
 0x2ca   : > { %v1095_v41 = vsub.f32 %v1041_v22, %v1087_v38 }
 0x2cc   : > { %v1100_v43 = vmul.f32 1.442695, %v1095_v41 }
 0x2e5   : > { %v1090_v39 = vpop.xlane.xlu1 %1089 }
 0x2e6   : > { %v1096_v40 = vsub.f32 %v1060_v28, %v1090_v39 }
 0x2e8   : > { %v1102_v42 = vmul.f32 1.442695, %v1096_v40 }
 0x2ea   : > { %3125 = vpow2.f32 %v1102_v42  ;;  %v3107_v42 = vld [vmem:[%s3925_s6] ss:$0 sm:$0xff] }
 0x2eb   : > { %3127 = vpow2.f32 %v1100_v43 }
 0x2ed   : > { %v1093_v44 = vpop.xlane.xlu1 %1092 }
 0x2ee   : > { %v1097_v45 = vsub.f32 %v1079_v30, %v1093_v44 }
 0x2f0   : > { %v3126_v46 = vpop.eup %3125  ;;  %v1104_v47 = vmul.f32 1.442695, %v1097_v45 }
 0x2f1   : > { %v1112_v48 = vsel %vm1005_vm5, %v3126_v46, 0.0  ;;  %v3128_v49 = vpop.eup %3127 }
 0x2f2   : > { %3129 = vpow2.f32 %v1104_v47  ;;  %1113 = vadd.xlane.f32.xlu0 %v1112_v48  ;;  %v1109_v52 = vsel %vm1005_vm5, %v3128_v49, 0.0 }
 0x2f8   : > { %v3130_v50 = vpop.eup %3129 }
 0x2f9   : > { %v1115_v51 = vsel %vm1005_vm5, %v3130_v50, 0.0 }
 0x2fa   : > { %1116 = vadd.xlane.f32.xlu1 %v1115_v51  ;;  %1110 = vadd.xlane.f32.xlu0 %v1109_v52  ;;  %v3017_v52 = vld [vmem:[%s3930_s11] sm:$0xff] }
 0x33a   : > { %v1108_v53 = vpop.xlane.xlu2 %1107 }
 0x33b   : > { %3131 = vrcp.f32 %v1108_v53 }
 0x341   : > { %v3132_v54 = vpop.eup %3131 }
 0x342   : > { %v1122_v55 = vmul.f32 %v3132_v54, %v3124_v36 }
 0x344   : > { %v1126_v57 = vpack.c.bf16 %v1122_v55, %v1122_v55 }
 0x346   : > { %2688 = vmatmul.msk.bf16.vlgmr.msrb.gmra.mxu0 %vm1005_vm5, %v1126_v57 }
 0x365   : > { %v1114_v56 = vpop.xlane.xlu0 %1113 }
 0x366   : > { %3133 = vrcp.f32 %v1114_v56 }
 0x36c   : > { %v3134_v58 = vpop.eup %3133 }
 0x36d   : > { %v1124_v59 = vmul.f32 %v3134_v58, %v3126_v46  ;;  %v1117_v60 = vpop.xlane.xlu1 %1116  ;;  %v1111_v62 = vpop.xlane.xlu0 %1110 }
 0x36e   : > { %3135 = vrcp.f32 %v1117_v60 }
 0x36f   : > { %v1128_v63 = vpack.c.bf16 %v1124_v59, %v1124_v59  ;;  %3137 = vrcp.f32 %v1111_v62 }
 0x371   : > { %2690 = vmatmul.msk.bf16.vlgmr.msrb.gmra.mxu2 %vm1005_vm5, %v1128_v63  ;;  %v3108_v63 = vld [vmem:[%s3928_s9] ss:$0 sm:$0xff] }
 0x374   : > { %v3136_v0 = vpop.eup %3135 }
 0x375   : > { %v3138_v1 = vpop.eup %3137  ;;  %v1125_v61 = vmul.f32 %v3136_v0, %v3130_v50 }
 0x376   : > { %v1123_v3 = vmul.f32 %v3138_v1, %v3128_v49 }
 0x377   : > { %v1129_v4 = vpack.c.bf16 %v1125_v61, %v1125_v61  ;;  %v3109_v61 = vld [vmem:[%s3929_s10] ss:$0 sm:$0xff] }
 0x378   : > { %v1127_v5 = vpack.c.bf16 %v1123_v3, %v1123_v3 }
 0x379   : > { %2691 = vmatmul.msk.bf16.vlgmr.msra.gmra.mxu3 %vm1005_vm5, %v1129_v4 }
 0x37a   : > { %2689 = vmatmul.msk.bf16.vlgmr.msra.gmra.mxu1 %vm1005_vm5, %v1127_v5 }
 0x37b   : > { %1467 = vmatpush.bf16.msra.mxu1 %v3026_v6 }
 0x37f   : > { %1468 = vmatpush.bf16.msra.mxu1 %v3025_v7 }
 0x3c3   : > { %v1150_v9 = vpop.f32.mrf.mxu0 }
 0x3c4   : > { %v1211_v11 = vpack.c.bf16 %v1150_v9, %v1150_v9  ;;  %v3024_v9 = vld [vmem:[%s3932_s13 + $0x28] sm:$0xff] }
 0x3c5   : > { %1469 = vmatpush.bf16.msra.mxu1 %v3024_v9  ;;  %v3112_v9 = vld [vmem:[%s3926_s7 + $0x1] ss:$0 sm:$0xff] }
 0x3c6   : > { %2692 = vmatmul.msk.bf16.vlgmr.msra.gmra.mxu0 %vm1005_vm5, %v1211_v11  ;;  %v3023_v11 = vld [vmem:[%s3932_s13 + $0x20] sm:$0xff] }
 0x3c9   : > { %1470 = vmatpush.bf16.msra.mxu1 %v3023_v11 }
 0x3cb   : > { %v1152_v12 = vpop.f32.mrf.mxu0 }
 0x3cc   : > { %v3022_v12 = vld [vmem:[%s3932_s13 + $0x18] sm:$0xff] }
 0x3cd   : > { %1471 = vmatpush.bf16.msra.mxu1 %v3022_v12  ;;  %v3113_v12 = vld [vmem:[%s3927_s8 + $0x1] ss:$0 sm:$0xff] }
 0x3d1   : > { %1472 = vmatpush.bf16.msra.mxu1 %v3021_v13 }
 0x3d5   : > { %1473 = vmatpush.bf16.msra.mxu1 %v3020_v15 }
 0x3d9   : > { %1474 = vmatpush.bf16.msra.mxu1 %v3019_v8  ;;  %v3044_v8 = vld [vmem:[%s3959_s3 + $0x148] sm:$0xff] }
 0x3f4   : > { %v1188_v19 = vpop.f32.mrf.mxu2 }
 0x3f5   : > { %v1213_v20 = vpack.c.bf16 %v1188_v19, %v1188_v19 }
 0x3f7   : > { %v1169_v21 = vpop.f32.mrf.mxu1  ;;  %2694 = vmatmul.msk.bf16.vlgmr.msra.gmra.mxu2 %vm1005_vm5, %v1213_v20 }
 0x3f8   : > { %v1212_v22 = vpack.c.bf16 %v1169_v21, %v1169_v21 }
 0x3fa   : > { %2693 = vmatmul.msk.bf16.vlgmr.msrb.gmra.mxu1 %vm1005_vm5, %v1212_v22 }
 0x3fc   : > { %v1190_v23 = vpop.f32.mrf.mxu2  ;;  %v1207_v24 = vpop.f32.mrf.mxu3 }
 0x3fd   : > { %v1214_v25 = vpack.c.bf16 %v1207_v24, %v1207_v24 }
 0x3ff   : > { %v1171_v26 = vpop.f32.mrf.mxu1  ;;  %2695 = vmatmul.msk.bf16.vlgmr.msrb.gmra.mxu3 %vm1005_vm5, %v1214_v25 }
 0x404   : > { %v1209_v27 = vpop.f32.mrf.mxu3 }
 0x443   : > { %v1234_v28 = vpop.f32.mrf.mxu0 }
 0x444   : > { %v1295_v33 = vsel %vm564_vm0, %v1234_v28, 0.0 }
 0x44b   : > { %v1236_v29 = vpop.f32.mrf.mxu0 }
 0x477   : > { %v1253_v30 = vpop.f32.mrf.mxu1 }
 0x478   : > { %v1296_v32 = vsel %vm564_vm0, %v1253_v30, 0.0 }
 0x479   : > { %v1297_v36 = vadd.f32 %v1296_v32, %v1295_v33 }
 0x47a   : > { %v1272_v31 = vpop.f32.mrf.mxu2 }
 0x47b   : > { %v1298_v34 = vsel %vm564_vm0, %v1272_v31, 0.0 }
 0x47c   : > { %v1299_v37 = vadd.f32 %v1298_v34, %v1297_v36  ;;  %v3111_v36 = vld [vmem:[%s3933_s14] ss:$0 sm:$0xff] }
 0x47f   : > { %v1255_v35 = vpop.f32.mrf.mxu1 }
 0x482   : > { %v1274_v38 = vpop.f32.mrf.mxu2  ;;  %v1291_v39 = vpop.f32.mrf.mxu3 }
 0x483   : > { %v1300_v40 = vsel %vm564_vm0, %v1291_v39, 0.0 }
 0x484   : > { %v1301_v41 = vadd.f32 %v1300_v40, %v1299_v37 }
 0x486   : > { %v1302_v43 = vadd.f32 %v1301_v41, %v3406_v2  ;;  %v3018_v2 = vld [vmem:[%s3930_s11 + $0x8] sm:$0xff] }
 0x487   : > { %1370 = vmatpush.bf16.msrb.mxu0 %v3018_v2  ;;  %v3029_v2 = vld [vmem:[%s3959_s3 + $0xd0] sm:$0xff] }
 0x488   : > { %v3591_v44 = vadd.f32 %v3107_v42, %v1302_v43 }
 0x48a   : > { %v1293_v45 = vpop.f32.mrf.mxu3  ;;  %v1310_v46 = vsel %vm564_vm0, %v3591_v44, 0.0 }
 0x48b   : > { %1311 = vadd.xlane.f32.xlu1 %v1310_v46  ;;  %1371 = vmatpush.bf16.msrb.mxu0 %v3017_v52  ;;  %v3031_v52 = vld [vmem:[%s3959_s3 + $0xe0] sm:$0xff] }
 0x4fe   : > { %v1312_v47 = vpop.xlane.xlu1 %1311 }
 0x4ff   : > { %v1313_v48 = vmul.f32 %v1312_v47, %v3410_v10 }
 0x501   : > { %v1314_v49 = vsub.f32 %v3591_v44, %v1313_v48  ;;  %v3028_v48 = vld [vmem:[%s3959_s3 + $0xc8] sm:$0xff] }
 0x502   : > { %1568 = vmatpush.bf16.msrb.mxu2 %v3028_v48 }
 0x503   : > { %v1315_v50 = vmul.f32 %v1314_v49, %v1314_v49 }
 0x505   : > { %v1316_v51 = vsel %vm564_vm0, %v1315_v50, 0.0  ;;  %v3040_v50 = vld [vmem:[%s3959_s3 + $0x128] sm:$0xff] }
 0x506   : > { %1317 = vadd.xlane.f32.xlu2 %v1316_v51  ;;  %1749 = vmatpush.bf16.msrb.mxu1 %v3040_v50  ;;  %v3027_v51 = vld [vmem:[%s3959_s3 + $0xc0] sm:$0xff] }
 0x507   : > { %1569 = vmatpush.bf16.msrb.mxu2 %v3027_v51 }
 0x579   : > { %v1318_v53 = vpop.xlane.xlu2 %1317 }
 0x57a   : > { %v1319_v54 = vmul.f32 %v1318_v53, %v3410_v10  ;;  %v3039_v53 = vld [vmem:[%s3959_s3 + $0x120] sm:$0xff] }
 0x57b   : > { %1750 = vmatpush.bf16.msrb.mxu1 %v3039_v53 }
 0x57c   : > { %v1320_v55 = vadd.f32 1e-05, %v1319_v54 }
 0x57e   : > { %3139 = vrsqrt.f32 %v1320_v55  ;;  %vm1327_vm9 = vweird.f32 %v1320_v55 }
 0x584   : > { %v3140_v57 = vpop.eup %3139 }
 0x585   : > { %v1322_v56 = vmul.f32 %v3140_v57, %v1320_v55  ;;  %vm1328_vm8 = vweird.f32 %v3140_v57  ;;  %v3034_v55 = vld [vmem:[%s3959_s3 + $0xf8] sm:$0xff] }
 0x586   : > { %vm1329_vm10 = vmor %vm1327_vm9, %vm1328_vm8  ;;  %1643 = vmatpush.bf16.msra.mxu2 %v3034_v55 }
 0x587   : > { %v1323_v58 = vmul.f32 %v3140_v57, %v1322_v56  ;;  %v3038_v56 = vld [vmem:[%s3959_s3 + $0x118] sm:$0xff] }
 0x589   : > { %v1324_v59 = vmul.f32 0.5, %v1323_v58 }
 0x58b   : > { %v1325_v60 = vsub.f32 1.5, %v1324_v59  ;;  %v3048_v59 = vld [vmem:[%s3959_s3 + $0x168] sm:$0xff] }
 0x58d   : > { %v1326_v62 = vmul.f32 %v3140_v57, %v1325_v60  ;;  %v3033_v60 = vld [vmem:[%s3959_s3 + $0xf0] sm:$0xff] }
 0x58e   : > { %1644 = vmatpush.bf16.msra.mxu2 %v3033_v60 }
 0x58f   : > { %v1330_v0 = vsel %vm1329_vm10, %v3140_v57, %v1326_v62  ;;  %v3036_v57 = vld [vmem:[%s3959_s3 + $0x108] sm:$0xff]  ;;  %v3035_v62 = vld [vmem:[%s3959_s3 + $0x100] sm:$0xff]  ;;  %vm2408_vm10 = vcmask 253952  }
 0x590   : > { %v1331_v1 = vmul.f32 %v1330_v0, %v1314_v49  ;;  %v3032_v49 = vld [vmem:[%s3959_s3 + $0xe8] sm:$0xff]  ;;  %v3037_v0 = vld [vmem:[%s3959_s3 + $0x110] sm:$0xff] }
 0x591   : > { %1618 = vmatpush.bf16.msra.mxu0 %v3032_v49 }
 0x592   : > { %v1335_v3 = vmul.f32 %v3108_v63, %v1331_v1  ;;  %v3047_v1 = vld [vmem:[%s3959_s3 + $0x160] sm:$0xff] }
 0x594   : > { %v1339_v4 = vadd.f32 %v3109_v61, %v1335_v3 }
 0x595   : > { %1619 = vmatpush.bf16.msra.mxu0 %v3031_v52 }
 0x596   : > { %v1340_v5 = vpack.c.bf16 %v1339_v4, %v1339_v4 }
 0x598   : > { %2704 = vmatmul.msk.bf16.vlgmr.msrb.gmra.mxu0 %vm564_vm0, %v1340_v5 }
 0x599   : > { %1724 = vmatpush.bf16.msrb.mxu0 %v3038_v56 }
 0x59d   : > { %1725 = vmatpush.bf16.msrb.mxu0 %v3037_v0 }
 0x615   : > { %v1373_v16 = vpop.f32.mrf.mxu0 }
 0x616   : > { %v1374_v18 = vadd.f32 %v3110_v14, %v1373_v16 }
 0x618   : > { %v2705_v19 = vmul.f32 -1.702, %v1374_v18 }
 0x61a   : > { %v1379_v20 = vmul.f32 1.442695, %v2705_v19  ;;  %v3046_v19 = vld [vmem:[%s3959_s3 + $0x158] sm:$0xff] }
 0x61c   : > { %3141 = vpow2.f32 %v1379_v20  ;;  %v3041_v20 = vld [vmem:[%s3959_s3 + $0x130] sm:$0xff] }
 0x61d   : > { %v1375_v21 = vpop.f32.mrf.mxu0 }
 0x61e   : > { %v3043_v21 = vld [vmem:[%s3959_s3 + $0x140] sm:$0xff] }
 0x622   : > { %v3142_v22 = vpop.eup %3141 }
 0x623   : > { %v1381_v23 = vadd.f32 1.0, %v3142_v22  ;;  %v3045_v22 = vld [vmem:[%s3959_s3 + $0x150] sm:$0xff] }
 0x625   : > { %3143 = vrcp.f32 %v1381_v23  ;;  %v1393_v27 = vand.u32 2147483648, %v1381_v23  ;;  %v1391_v29 = vand.u32 2147483647, %v1381_v23  ;;  %vm1387_vm12 = vweird.f32 %v1381_v23 }
 0x627   : > { %v1394_v31 = vor.u32 1.1754944e-38, %v1393_v27  ;;  %vm1392_vm14 = vcmp.eq.f32.partialorder %v1391_v29, 8.507059e+37  ;;  %v3747_v27 = vld [vmem:[%s3923_s4 + $0xc] sm:$0xf] }
 0x628   : > { %v1537_v29 = vrot.slane %v3747_v27, 2  ;;  %v1536_v50 = vrot.slane %v3747_v27, 1 }
 0x62a   : > { %v1540_v55 = vperm.slane %v1536_v50, 0 }
 0x62b   : > { %v3144_v24 = vpop.eup %3143 }
 0x62c   : > { %v1383_v25 = vmul.f32 %v3144_v24, %v1381_v23  ;;  %vm1388_vm11 = vweird.f32 %v3144_v24  ;;  %v3050_v23 = vld [vmem:[%s3959_s3 + $0x178] sm:$0xff] }
 0x62d   : > { %vm1389_vm13 = vmor %vm1387_vm12, %vm1388_vm11 }
 0x62e   : > { %v1384_v26 = vsub.f32 1.0, %v1383_v25  ;;  %v2809_v25 = vld [vmem:[%s3923_s4 + $0x10] sm:$0xf] }
 0x630   : > { %v1385_v28 = vmul.f32 %v3144_v24, %v1384_v26  ;;  %v1671_v26 = vrot.slane %v2809_v25, 2 }
 0x632   : > { %v1386_v30 = vadd.f32 %v3144_v24, %v1385_v28  ;;  %v1675_v28 = vperm.slane %v1671_v26, 0 }
 0x634   : > { %v1390_v32 = vsel %vm1389_vm13, %v3144_v24, %v1386_v30  ;;  %v3049_v24 = vld [vmem:[%s3959_s3 + $0x170] sm:$0xff] }
 0x635   : > { %v1395_v33 = vsel %vm1392_vm14, %v1394_v31, %v1390_v32  ;;  %vm2466_vm14 = vcmask 122880  }
 0x636   : > { %v1397_v34 = vmul.f32 %v1395_v33, %v1374_v18  ;;  %v3042_v18 = vld [vmem:[%s3959_s3 + $0x138] sm:$0xff]  ;;  %v1541_v33 = vperm.slane %v1537_v29, 0 }
 0x638   : > { %v1398_v35 = vpack.c.bf16 %v1397_v34, %v1397_v34 }
 0x63a   : > { %1475 = vmatmul.bf16.vlgmr.msra.gmra.mxu1 %v1398_v35 }
 0x63b   : > { %1880 = vmatpush.bf16.msra.mxu1 %v3048_v59 }
 0x63f   : > { %1881 = vmatpush.bf16.msra.mxu1 %v3047_v1  ;;  %v1539_v1 = vperm.slane %v3747_v27, 0 }
 0x6b7   : > { %v1476_v37 = vpop.f32.mrf.mxu1 }
 0x6b8   : > { %v1477_v38 = vadd.f32 %v3111_v36, %v1476_v37 }
 0x6ba   : > { %v3643_v39 = vadd.f32 %v1477_v38, %v3591_v44  ;;  %v3030_v44 = vld [vmem:[%s3959_s3 + $0xd8] sm:$0xff]  ;;  %v3754_v38 = vld [vmem:[%s3923_s4 + $0x14] sm:$0xf] }
 0x6bb   : > { %1593 = vmatpush.bf16.msra.mxu3 %v3030_v44 }
 0x6bc   : > { %v1485_v40 = vsel %vm564_vm0, %v3643_v39, 0.0 }
 0x6bd   : > { %1486 = vadd.xlane.f32.xlu0 %v1485_v40 }
 0x6bf   : > { %v1478_v41 = vpop.f32.mrf.mxu1  ;;  %1594 = vmatpush.bf16.msra.mxu3 %v3029_v2 }
 0x6c3   : > { %1699 = vmatpush.bf16.msrb.mxu3 %v3036_v57 }
 0x6c7   : > { %1700 = vmatpush.bf16.msrb.mxu3 %v3035_v62 }
 0x730   : > { %v1487_v42 = vpop.xlane.xlu0 %1486 }
 0x731   : > { %v1488_v43 = vmul.f32 %v1487_v42, %v3410_v10 }
 0x733   : > { %v1489_v45 = vsub.f32 %v3643_v39, %v1488_v43  ;;  %v1670_v43 = vrot.slane %v2809_v25, 1 }
 0x735   : > { %v1490_v46 = vmul.f32 %v1489_v45, %v1489_v45  ;;  %v1674_v44 = vperm.slane %v1670_v43, 0 }
 0x737   : > { %v1491_v47 = vsel %vm564_vm0, %v1490_v46, 0.0 }
 0x738   : > { %1492 = vadd.xlane.f32.xlu1 %v1491_v47 }
 0x7ab   : > { %v1493_v54 = vpop.xlane.xlu1 %1492 }
 0x7ac   : > { %v1494_v58 = vmul.f32 %v1493_v54, %v3410_v10  ;;  %v1673_v54 = vperm.slane %v2809_v25, 0 }
 0x7ae   : > { %v1495_v63 = vadd.f32 1e-05, %v1494_v58 }
 0x7b0   : > { %3145 = vrsqrt.f32 %v1495_v63  ;;  %vm1502_vm1 = vweird.f32 %v1495_v63 }
 0x7b6   : > { %v3146_v61 = vpop.eup %3145 }
 0x7b7   : > { %v1497_v3 = vmul.f32 %v3146_v61, %v1495_v63  ;;  %vm1503_vm15 = vweird.f32 %v3146_v61 }
 0x7b8   : > { %vm1504_vm2 = vmor %vm1502_vm1, %vm1503_vm15 }
 0x7b9   : > { %v1498_v4 = vmul.f32 %v3146_v61, %v1497_v3 }
 0x7bb   : > { %v1499_v5 = vmul.f32 0.5, %v1498_v4 }
 0x7bd   : > { %v1500_v6 = vsub.f32 1.5, %v1499_v5  ;;  %v1801_v5 = vrot.slane %v3754_v38, 1 }
 0x7bf   : > { %v1501_v7 = vmul.f32 %v3146_v61, %v1500_v6 }
 0x7c1   : > { %v1505_v11 = vsel %vm1504_vm2, %v3146_v61, %v1501_v7 }
 0x7c2   : > { %v1506_v13 = vmul.f32 %v1505_v11, %v1489_v45  ;;  %v1802_v45 = vrot.slane %v3754_v38, 2 }
 0x7c4   : > { %v1510_v14 = vmul.f32 %v3112_v9, %v1506_v13  ;;  %v1806_v49 = vperm.slane %v1802_v45, 0  ;;  %v1805_v13 = vperm.slane %v1801_v5, 0 }
 0x7c6   : > { %v1514_v15 = vadd.f32 %v3113_v12, %v1510_v14  ;;  %v1672_v14 = vrot.slane %v2809_v25, 3 }
 0x7c8   : > { %v1515_v16 = vpack.c.bf16 %v1514_v15, %v1514_v15 }
 0x7ca   : > { %2765 = vmatmul.msk.bf16.vlgmr.msrb.gmra.mxu2 %vm564_vm0, %v1515_v16  ;;  %2774 = vmatmul.msk.bf16.vlgmr.msra.gmra.mxu3 %vm564_vm0, %v1515_v16 }
 0x7cb   : > { %2783 = vmatmul.msk.bf16.vlgmr.msra.gmra.mxu0 %vm564_vm0, %v1515_v16  ;;  %2836 = vmatmul.msk.bf16.vlgmr.msrb.gmra.mxu1 %vm564_vm0, %v1515_v16 }
 0x7cc   : > { %1774 = vmatpush.bf16.msrb.mxu2 %v3042_v18  ;;  %1830 = vmatpush.bf16.msra.mxu3 %v3044_v8  ;;  %v1676_v8 = vperm.slane %v1672_v14, 0 }
 0x7cd   : > { %1855 = vmatpush.bf16.msra.mxu0 %v3046_v19  ;;  %v1804_v19 = vperm.slane %v3754_v38, 0 }
 0x7d0   : > { %1775 = vmatpush.bf16.msrb.mxu2 %v3041_v20  ;;  %1831 = vmatpush.bf16.msra.mxu3 %v3043_v21  ;;  %v1538_v21 = vrot.slane %v3747_v27, 3 }
 0x7d1   : > { %1856 = vmatpush.bf16.msra.mxu0 %v3045_v22 }
 0x7d2   : > { %v1542_v29 = vperm.slane %v1538_v21, 0 }
 0x7da   : > { %2792 = vmatmul.msk.bf16.vlgmr.msra.gmra.mxu2 %vm564_vm0, %v1515_v16  ;;  %2818 = vmatmul.msk.bf16.vlgmr.msrb.gmra.mxu3 %vm564_vm0, %v1515_v16 }
 0x7db   : > { %2827 = vmatmul.msk.bf16.vlgmr.msrb.gmra.mxu0 %vm564_vm0, %v1515_v16  ;;  %2889 = vmatmul.msk.bf16.vlgmr.msra.gmra.mxu1 %vm564_vm0, %v1515_v16 }
 0x7dc   : > { %1905 = vmatpush.bf16.msra.mxu2 %v3050_v23 }
 0x7e0   : > { %1906 = vmatpush.bf16.msra.mxu2 %v3049_v24 }
 0x7ea   : > { %2845 = vmatmul.msk.bf16.vlgmr.msrb.gmra.mxu2 %vm564_vm0, %v1515_v16  ;;  %2871 = vmatmul.msk.bf16.vlgmr.msra.gmra.mxu3 %vm564_vm0, %v1515_v16 }
 0x7eb   : > { %2880 = vmatmul.msk.bf16.vlgmr.msra.gmra.mxu0 %vm564_vm0, %v1515_v16 }
 0x7fa   : > { %2898 = vmatmul.msk.bf16.vlgmr.msra.gmra.mxu2 %vm564_vm0, %v1515_v16 }
 0x848   : > { %v1621_v30 = vpop.f32.mrf.mxu0  ;;  %v1752_v31 = vpop.f32.mrf.mxu1 }
 0x849   : > { %v1753_v32 = vadd.f32 %v1752_v31, %v1675_v28  ;;  %v1622_v40 = vadd.f32 %v1621_v30, %v1541_v33 }
 0x84b   : > { %v1918_v34 = vpack.c.bf16 %v1753_v32, %v1753_v32  ;;  %v1914_v46 = vpack.c.bf16 %v1622_v40, %v1622_v40 }
 0x84d   : > { %v1962_v35 = vsel %vm1005_vm5, %v1918_v34, 0  ;;  %v1571_v36 = vpop.f32.mrf.mxu2  ;;  %v1596_v37 = vpop.f32.mrf.mxu3 }
 0x84e   : > { %1971 = vmatpush.bf16.xpose.msrb.mxu1 %v1962_v35  ;;  %v1597_v0 = vadd.f32 %v1596_v37, %v1540_v55  ;;  %v1572_v9 = vadd.f32 %v1571_v36, %v1539_v1  ;;  %v1803_v36 = vrot.slane %v3754_v38, 3 }
 0x850   : > { %v1623_v41 = vpop.f32.mrf.mxu0  ;;  %v1754_v42 = vpop.f32.mrf.mxu1  ;;  %v1913_v7 = vpack.c.bf16 %v1597_v0, %v1597_v0  ;;  %v1912_v15 = vpack.c.bf16 %v1572_v9, %v1572_v9  ;;  %v1807_v40 = vperm.slane %v1803_v36, 0  ;;  %v2907_v36 = vld [vmem:[%s3924_s5 + $0x10] sm:$0xf] }
 0x855   : > { %2901 = vmatmul.msk.bf16.vlgmr.msrb.gmra.mxu1 %vm1005_vm5, %v1914_v46  ;;  %v1573_v47 = vpop.f32.mrf.mxu2  ;;  %v1598_v48 = vpop.f32.mrf.mxu3 }
 0x858   : > { %v1727_v51 = vpop.f32.mrf.mxu0  ;;  %v1883_v2 = vpop.f32.mrf.mxu1 }
 0x859   : > { %v1728_v52 = vadd.f32 %v1727_v51, %v1674_v44  ;;  %v1884_v53 = vadd.f32 %v1883_v2, %v1806_v49 }
 0x85b   : > { %v1917_v57 = vpack.c.bf16 %v1728_v52, %v1728_v52  ;;  %v2046_v56 = vpack.c.bf16 %v1884_v53, %v1884_v53 }
 0x85d   : > { %v1943_v58 = vsel %vm1005_vm5, %v1917_v57, 0  ;;  %v2090_v59 = vsel %vm1137_vm6, %v2046_v56, 0  ;;  %v1646_v60 = vpop.f32.mrf.mxu2  ;;  %v1702_v62 = vpop.f32.mrf.mxu3 }
 0x85e   : > { %v1703_v63 = vadd.f32 %v1702_v62, %v1673_v54  ;;  %1952 = vmatpush.bf16.xpose.msrb.mxu0 %v1943_v58  ;;  %2099 = vmatpush.bf16.msra.mxu1 %v2090_v59  ;;  %v1647_v34 = vadd.f32 %v1646_v60, %v1542_v29 }
 0x860   : > { %v1916_v61 = vpack.c.bf16 %v1703_v63, %v1703_v63  ;;  %v1729_v3 = vpop.f32.mrf.mxu0  ;;  %v1885_v4 = vpop.f32.mrf.mxu1  ;;  %v1915_v37 = vpack.c.bf16 %v1647_v34, %v1647_v34 }
 0x862   : > { %v1924_v6 = vsel %vm1005_vm5, %v1916_v61, 0 }
 0x863   : > { %1933 = vmatpush.bf16.xpose.msrb.mxu3 %v1924_v6 }
 0x865   : > { %2900 = vmatmul.msk.bf16.vlgmr.msrb.gmra.mxu0 %vm1005_vm5, %v1913_v7  ;;  %v1648_v11 = vpop.f32.mrf.mxu2  ;;  %v1704_v12 = vpop.f32.mrf.mxu3 }
 0x868   : > { %v1858_v16 = vpop.f32.mrf.mxu0 }
 0x869   : > { %v1859_v18 = vadd.f32 %v1858_v16, %v1805_v13 }
 0x86a   : > { %2899 = vmatmul.msk.bf16.vlgmr.msrb.gmra.mxu3 %vm1005_vm5, %v1912_v15 }
 0x86b   : > { %v2045_v20 = vpack.c.bf16 %v1859_v18, %v1859_v18 }
 0x86d   : > { %v2071_v22 = vsel %vm1137_vm6, %v2045_v20, 0  ;;  %v1777_v23 = vpop.f32.mrf.mxu2  ;;  %v1833_v24 = vpop.f32.mrf.mxu3 }
 0x86e   : > { %v1778_v26 = vadd.f32 %v1777_v23, %v1676_v8  ;;  %v1834_v28 = vadd.f32 %v1833_v24, %v1804_v19  ;;  %2080 = vmatpush.bf16.msra.mxu0 %v2071_v22 }
 0x870   : > { %v1919_v25 = vpack.c.bf16 %v1778_v26, %v1778_v26  ;;  %v2044_v30 = vpack.c.bf16 %v1834_v28, %v1834_v28  ;;  %v1860_v31 = vpop.f32.mrf.mxu0 }
 0x872   : > { %v1981_v32 = vsel %vm1005_vm5, %v1919_v25, 0  ;;  %v2052_v33 = vsel %vm1137_vm6, %v2044_v30, 0 }
 0x873   : > { %1990 = vmatpush.bf16.xpose.msrb.mxu2 %v1981_v32  ;;  %2061 = vmatpush.bf16.msra.mxu3 %v2052_v33 }
 0x875   : > { %v1779_v35 = vpop.f32.mrf.mxu2  ;;  %v1835_v27 = vpop.f32.mrf.mxu3 }
 0x876   : > { %v2908_v35 = vld [vmem:[%s3924_s5 + $0x14] sm:$0xf] }
 0x877   : > { %v2156_v27 = vsel %vm1137_vm6, %v2908_v35, 0  ;;  %v3059_v35 = vld [vmem:[%s3932_s13 + $0x70] sm:$0xff] }
 0x878   : > { %2165 = vmatpush.bf16.msrb.mxu0 %v2156_v27  ;;  %v3058_v27 = vld [vmem:[%s3932_s13 + $0x68] sm:$0xff] }
 0x87a   : > { %2902 = vmatmul.msk.bf16.vlgmr.msrb.gmra.mxu2 %vm1005_vm5, %v1915_v37  ;;  %v2137_v37 = vsel %vm1137_vm6, %v2907_v36, 0  ;;  %v3057_v36 = vld [vmem:[%s3932_s13 + $0x60] sm:$0xff] }
 0x87b   : > { %2146 = vmatpush.bf16.msrb.mxu3 %v2137_v37  ;;  %v3056_v37 = vld [vmem:[%s3932_s13 + $0x58] sm:$0xff] }
 0x87d   : > { %v1908_v41 = vpop.f32.mrf.mxu2 }
 0x87e   : > { %v1909_v42 = vadd.f32 %v1908_v41, %v1807_v40  ;;  %v2909_v40 = vld [vmem:[%s3924_s5 + $0x18] sm:$0xf] }
 0x87f   : > { %v2175_v41 = vsel %vm1137_vm6, %v2909_v40, 0  ;;  %v3055_v40 = vld [vmem:[%s3932_s13 + $0x50] sm:$0xff] }
 0x880   : > { %v2047_v43 = vpack.c.bf16 %v1909_v42, %v1909_v42  ;;  %2184 = vmatpush.bf16.msrb.mxu1 %v2175_v41  ;;  %v2910_v42 = vld [vmem:[%s3924_s5 + $0x1c] sm:$0xf]  ;;  %v3117_v41 = vld [vmem:[%s3961_s24 + $0x1] ss:$0 sm:$0xff] }
 0x882   : > { %v2109_v45 = vsel %vm1137_vm6, %v2047_v43, 0  ;;  %v2194_v43 = vsel %vm1137_vm6, %v2910_v42, 0  ;;  %v3054_v42 = vld [vmem:[%s3932_s13 + $0x48] sm:$0xff] }
 0x883   : > { %2118 = vmatpush.bf16.msra.mxu2 %v2109_v45 }
 0x885   : > { %v1910_v46 = vpop.f32.mrf.mxu2 }
 0x887   : > { %2203 = vmatpush.bf16.msrb.mxu2 %v2194_v43 }
 0x8d2   : > { %v1973_v47 = vpop.f32.mrf.mxu1 }
 0x8d3   : > { %v1974_v53 = vadd.f32 %v1973_v47, %v3545_v17 }
 0x8d5   : > { %v2002_v55 = vsel %vm1005_vm5, %v1974_v53, -inf }
 0x8da   : > { %v1975_v48 = vpop.f32.mrf.mxu1 }
 0x8e2   : > { %v1954_v44 = vpop.f32.mrf.mxu0 }
 0x8e3   : > { %v1955_v49 = vadd.f32 %v1954_v44, %v3545_v17 }
 0x8e5   : > { %v1999_v50 = vsel %vm1005_vm5, %v1955_v49, -inf }
 0x8e6   : > { %2000 = vmax.xlane.f32.xlu1 %v1999_v50 }
 0x8ea   : > { %v1956_v38 = vpop.f32.mrf.mxu0 }
 0x8ed   : > { %v1935_v51 = vpop.f32.mrf.mxu3 }
 0x8ee   : > { %v1936_v2 = vadd.f32 %v1935_v51, %v3545_v17 }
 0x8f0   : > { %v1996_v52 = vsel %vm1005_vm5, %v1936_v2, -inf }
 0x8f1   : > { %1997 = vmax.xlane.f32.xlu2 %v1996_v52 }
 0x8f5   : > { %v1937_v54 = vpop.f32.mrf.mxu3 }
 0x8f9   : > { %2003 = vmax.xlane.f32.xlu2 %v2002_v55 }
 0x8fd   : > { %v1992_v57 = vpop.f32.mrf.mxu2 }
 0x8fe   : > { %v1993_v56 = vadd.f32 %v1992_v57, %v3545_v17 }
 0x900   : > { %v2005_v58 = vsel %vm1005_vm5, %v1993_v56, -inf }
 0x901   : > { %2006 = vmax.xlane.f32.xlu0 %v2005_v58 }
 0x905   : > { %v1994_v59 = vpop.f32.mrf.mxu2 }
 0x959   : > { %v2001_v60 = vpop.xlane.xlu1 %2000 }
 0x95a   : > { %v2009_v62 = vsub.f32 %v1955_v49, %v2001_v60 }
 0x95c   : > { %v2014_v63 = vmul.f32 1.442695, %v2009_v62 }
 0x95e   : > { %3147 = vpow2.f32 %v2014_v63 }
 0x964   : > { %v3148_v0 = vpop.eup %3147  ;;  %v1998_v1 = vpop.xlane.xlu2 %1997 }
 0x965   : > { %v2008_v61 = vsub.f32 %v1936_v2, %v1998_v1  ;;  %v2023_v3 = vsel %vm1005_vm5, %v3148_v0, 0.0 }
 0x966   : > { %2024 = vadd.xlane.f32.xlu2 %v2023_v3 }
 0x967   : > { %v2012_v4 = vmul.f32 1.442695, %v2008_v61 }
 0x969   : > { %3149 = vpow2.f32 %v2012_v4 }
 0x96c   : > { %v2004_v5 = vpop.xlane.xlu2 %2003 }
 0x96d   : > { %v2010_v6 = vsub.f32 %v1974_v53, %v2004_v5  ;;  %v3114_v5 = vld [vmem:[%s3925_s6 + $0x1] ss:$0 sm:$0xff] }
 0x96f   : > { %v3150_v7 = vpop.eup %3149  ;;  %v2016_v17 = vmul.f32 1.442695, %v2010_v6 }
 0x970   : > { %v2020_v9 = vsel %vm1005_vm5, %v3150_v7, 0.0 }
 0x971   : > { %3151 = vpow2.f32 %v2016_v17  ;;  %2021 = vadd.xlane.f32.xlu0 %v2020_v9 }
 0x974   : > { %v2007_v11 = vpop.xlane.xlu0 %2006 }
 0x975   : > { %v2011_v12 = vsub.f32 %v1993_v56, %v2007_v11 }
 0x977   : > { %v3152_v13 = vpop.eup %3151  ;;  %v2018_v14 = vmul.f32 1.442695, %v2011_v12 }
 0x978   : > { %v2026_v15 = vsel %vm1005_vm5, %v3152_v13, 0.0 }
 0x979   : > { %3153 = vpow2.f32 %v2018_v14  ;;  %2027 = vadd.xlane.f32.xlu0 %v2026_v15 }
 0x97f   : > { %v3154_v16 = vpop.eup %3153 }
 0x980   : > { %v2029_v18 = vsel %vm1005_vm5, %v3154_v16, 0.0 }
 0x981   : > { %2030 = vadd.xlane.f32.xlu1 %v2029_v18 }
 0x9d9   : > { %v2025_v8 = vpop.xlane.xlu2 %2024 }
 0x9da   : > { %3155 = vrcp.f32 %v2025_v8 }
 0x9e0   : > { %v3156_v19 = vpop.eup %3155 }
 0x9e1   : > { %v2037_v20 = vmul.f32 %v3156_v19, %v3148_v0 }
 0x9e3   : > { %v2041_v21 = vpack.c.bf16 %v2037_v20, %v2037_v20 }
 0x9e4   : > { %v2022_v22 = vpop.xlane.xlu0 %2021 }
 0x9e5   : > { %3157 = vrcp.f32 %v2022_v22  ;;  %2904 = vmatmul.msk.bf16.vlgmr.msra.gmra.mxu0 %vm1005_vm5, %v2041_v21 }
 0x9eb   : > { %v3158_v23 = vpop.eup %3157 }
 0x9ec   : > { %v2036_v24 = vmul.f32 %v3158_v23, %v3150_v7  ;;  %v2028_v26 = vpop.xlane.xlu0 %2027 }
 0x9ed   : > { %3159 = vrcp.f32 %v2028_v26 }
 0x9ee   : > { %v2040_v28 = vpack.c.bf16 %v2036_v24, %v2036_v24 }
 0x9f0   : > { %2903 = vmatmul.msk.bf16.vlgmr.msra.gmra.mxu3 %vm1005_vm5, %v2040_v28  ;;  %v3115_v28 = vld [vmem:[%s3928_s9 + $0x1] ss:$0 sm:$0xff] }
 0x9f3   : > { %v3160_v29 = vpop.eup %3159 }
 0x9f4   : > { %v2038_v25 = vmul.f32 %v3160_v29, %v3152_v13  ;;  %v2031_v30 = vpop.xlane.xlu1 %2030 }
 0x9f5   : > { %3161 = vrcp.f32 %v2031_v30 }
 0x9f6   : > { %v2042_v31 = vpack.c.bf16 %v2038_v25, %v2038_v25  ;;  %v3116_v25 = vld [vmem:[%s3929_s10 + $0x1] ss:$0 sm:$0xff] }
 0x9f8   : > { %2905 = vmatmul.msk.bf16.vlgmr.msra.gmra.mxu1 %vm1005_vm5, %v2042_v31 }
 0x9fb   : > { %v3162_v32 = vpop.eup %3161 }
 0x9fc   : > { %v2039_v33 = vmul.f32 %v3162_v32, %v3154_v16  ;;  %v3051_v16 = vld [vmem:[%s3930_s11 + $0x10] sm:$0xff] }
 0x9fe   : > { %v2043_v34 = vpack.c.bf16 %v2039_v33, %v2039_v33 }
 0xa00   : > { %2906 = vmatmul.msk.bf16.vlgmr.msra.gmra.mxu2 %vm1005_vm5, %v2043_v34  ;;  %v3060_v34 = vld [vmem:[%s3932_s13 + $0x78] sm:$0xff] }
 0xa01   : > { %2388 = vmatpush.bf16.msra.mxu0 %v3060_v34 }
 0xa05   : > { %2389 = vmatpush.bf16.msra.mxu0 %v3059_v35 }
 0xa09   : > { %2390 = vmatpush.bf16.msra.mxu0 %v3058_v27 }
 0xa0d   : > { %2391 = vmatpush.bf16.msra.mxu0 %v3057_v36 }
 0xa11   : > { %2392 = vmatpush.bf16.msra.mxu0 %v3056_v37 }
 0xa15   : > { %2393 = vmatpush.bf16.msra.mxu0 %v3055_v40 }
 0xa19   : > { %2394 = vmatpush.bf16.msra.mxu0 %v3054_v42 }
 0xa62   : > { %v2082_v45 = vpop.f32.mrf.mxu0 }
 0xa63   : > { %v2125_v46 = vpack.c.bf16 %v2082_v45, %v2082_v45 }
 0xa65   : > { %2912 = vmatmul.msk.bf16.vlgmr.msrb.gmra.mxu0 %vm1005_vm5, %v2125_v46  ;;  %v3053_v46 = vld [vmem:[%s3932_s13 + $0x40] sm:$0xff] }
 0xa66   : > { %2395 = vmatpush.bf16.msra.mxu0 %v3053_v46 }
 0xa6a   : > { %v2084_v47 = vpop.f32.mrf.mxu0 }
 0xa73   : > { %v2063_v48 = vpop.f32.mrf.mxu3 }
 0xa74   : > { %v2124_v44 = vpack.c.bf16 %v2063_v48, %v2063_v48 }
 0xa75   : > { %v2101_v49 = vpop.f32.mrf.mxu1 }
 0xa76   : > { %v2126_v50 = vpack.c.bf16 %v2101_v49, %v2101_v49  ;;  %2911 = vmatmul.msk.bf16.vlgmr.msrb.gmra.mxu3 %vm1005_vm5, %v2124_v44 }
 0xa78   : > { %2913 = vmatmul.msk.bf16.vlgmr.msrb.gmra.mxu1 %vm1005_vm5, %v2126_v50 }
 0xa7b   : > { %v2065_v38 = vpop.f32.mrf.mxu3 }
 0xa7d   : > { %v2103_v51 = vpop.f32.mrf.mxu1 }
 0xa83   : > { %v2120_v2 = vpop.f32.mrf.mxu2 }
 0xa84   : > { %v2127_v52 = vpack.c.bf16 %v2120_v2, %v2120_v2 }
 0xa86   : > { %2914 = vmatmul.msk.bf16.vlgmr.msrb.gmra.mxu2 %vm1005_vm5, %v2127_v52 }
 0xa8b   : > { %v2122_v53 = vpop.f32.mrf.mxu2 }
 0xae2   : > { %v2167_v54 = vpop.f32.mrf.mxu0 }
 0xae3   : > { %v2210_v62 = vsel %vm564_vm0, %v2167_v54, 0.0 }
 0xaea   : > { %v2169_v55 = vpop.f32.mrf.mxu0 }
 0xaf5   : > { %v2186_v57 = vpop.f32.mrf.mxu1 }
 0xaf6   : > { %v2212_v0 = vsel %vm564_vm0, %v2186_v57, 0.0 }
 0xaf9   : > { %v2148_v56 = vpop.f32.mrf.mxu3 }
 0xafa   : > { %v2209_v60 = vsel %vm564_vm0, %v2148_v56, 0.0 }
 0xafb   : > { %v2211_v63 = vadd.f32 %v2210_v62, %v2209_v60  ;;  %v3118_v62 = vld [vmem:[%s3933_s14 + $0x1] ss:$0 sm:$0xff] }
 0xafd   : > { %v2188_v58 = vpop.f32.mrf.mxu1  ;;  %v2213_v61 = vadd.f32 %v2212_v0, %v2211_v63 }
 0xb01   : > { %v2150_v59 = vpop.f32.mrf.mxu3 }
 0xb09   : > { %v2205_v1 = vpop.f32.mrf.mxu2 }
 0xb0a   : > { %v2214_v3 = vsel %vm564_vm0, %v2205_v1, 0.0 }
 0xb0b   : > { %v2215_v4 = vadd.f32 %v2214_v3, %v2213_v61 }
 0xb0d   : > { %v2216_v6 = vadd.f32 %v2215_v4, %v3643_v39  ;;  %v3052_v39 = vld [vmem:[%s3930_s11 + $0x18] sm:$0xff] }
 0xb0e   : > { %2289 = vmatpush.bf16.msra.mxu3 %v3052_v39 }
 0xb0f   : > { %v3818_v7 = vadd.f32 %v3114_v5, %v2216_v6 }
 0xb11   : > { %v2207_v17 = vpop.f32.mrf.mxu2  ;;  %v2227_v9 = vsel %vm564_vm0, %v3818_v7, 0.0 }
 0xb12   : > { %2228 = vadd.xlane.f32.xlu1 %v2227_v9  ;;  %2290 = vmatpush.bf16.msra.mxu3 %v3051_v16 }
 0xb85   : > { %v2229_v11 = vpop.xlane.xlu1 %2228 }
 0xb86   : > { %v2230_v12 = vmul.f32 %v2229_v11, %v3410_v10 }
 0xb88   : > { %v2231_v13 = vsub.f32 %v3818_v7, %v2230_v12  ;;  %v3062_v12 = vld [vmem:[%s3936_s17 + $0x8] sm:$0xff] }
 0xb89   : > { %2459 = vmatpush.bf16.msra.mxu1 %v3062_v12 }
 0xb8a   : > { %v2232_v14 = vmul.f32 %v2231_v13, %v2231_v13 }
 0xb8c   : > { %v2233_v15 = vsel %vm564_vm0, %v2232_v14, 0.0 }
 0xb8d   : > { %2234 = vadd.xlane.f32.xlu2 %v2233_v15 }
 0xc00   : > { %v2235_v18 = vpop.xlane.xlu2 %2234 }
 0xc01   : > { %v2236_v8 = vmul.f32 %v2235_v18, %v3410_v10 }
 0xc03   : > { %v2237_v19 = vadd.f32 1e-05, %v2236_v8 }
 0xc05   : > { %3163 = vrsqrt.f32 %v2237_v19  ;;  %vm2244_vm4 = vweird.f32 %v2237_v19 }
 0xc0b   : > { %v3164_v20 = vpop.eup %3163 }
 0xc0c   : > { %v2239_v21 = vmul.f32 %v3164_v20, %v2237_v19  ;;  %vm2245_vm3 = vweird.f32 %v3164_v20 }
 0xc0d   : > { %vm2246_vm5 = vmor %vm2244_vm4, %vm2245_vm3 }
 0xc0e   : > { %v2240_v22 = vmul.f32 %v3164_v20, %v2239_v21  ;;  %v2406_v21 = vld [vmem:[%s3934_s15] sm:$0x1] }
 0xc10   : > { %v2241_v23 = vmul.f32 0.5, %v2240_v22 }
 0xc12   : > { %v2242_v24 = vsub.f32 1.5, %v2241_v23 }
 0xc14   : > { %v2243_v26 = vmul.f32 %v3164_v20, %v2242_v24 }
 0xc16   : > { %v2247_v29 = vsel %vm2246_vm5, %v3164_v20, %v2243_v26 }
 0xc17   : > { %v2248_v30 = vmul.f32 %v2247_v29, %v2231_v13 }
 0xc19   : > { %v2252_v31 = vmul.f32 %v3115_v28, %v2248_v30 }
 0xc1b   : > { %v2256_v32 = vadd.f32 %v3116_v25, %v2252_v31 }
 0xc1d   : > { %v2257_v33 = vpack.c.bf16 %v2256_v32, %v2256_v32 }
 0xc1f   : > { %2931 = vmatmul.msk.bf16.vlgmr.msra.gmra.mxu3 %vm564_vm0, %v2257_v33 }
 0xca2   : > { %v2292_v43 = vpop.f32.mrf.mxu3 }
 0xca3   : > { %v2293_v45 = vadd.f32 %v3117_v41, %v2292_v43 }
 0xca5   : > { %v2932_v47 = vmul.f32 -1.702, %v2293_v45 }
 0xca7   : > { %v2298_v48 = vmul.f32 1.442695, %v2932_v47 }
 0xca9   : > { %3165 = vpow2.f32 %v2298_v48 }
 0xcaa   : > { %v2294_v44 = vpop.f32.mrf.mxu3 }
 0xcaf   : > { %v3166_v49 = vpop.eup %3165 }
 0xcb0   : > { %v2300_v50 = vadd.f32 1.0, %v3166_v49 }
 0xcb2   : > { %3167 = vrcp.f32 %v2300_v50  ;;  %v2312_v52 = vand.u32 2147483648, %v2300_v50  ;;  %v2310_v54 = vand.u32 2147483647, %v2300_v50  ;;  %vm2306_vm7 = vweird.f32 %v2300_v50 }
 0xcb4   : > { %v2313_v57 = vor.u32 1.1754944e-38, %v2312_v52  ;;  %vm2311_vm9 = vcmp.eq.f32.partialorder %v2310_v54, 8.507059e+37 }
 0xcb8   : > { %v3168_v38 = vpop.eup %3167 }
 0xcb9   : > { %v2302_v51 = vmul.f32 %v3168_v38, %v2300_v50  ;;  %vm2307_vm6 = vweird.f32 %v3168_v38 }
 0xcba   : > { %vm2308_vm8 = vmor %vm2306_vm7, %vm2307_vm6 }
 0xcbb   : > { %v2303_v2 = vsub.f32 1.0, %v2302_v51 }
 0xcbd   : > { %v2304_v53 = vmul.f32 %v3168_v38, %v2303_v2 }
 0xcbf   : > { %v2305_v55 = vadd.f32 %v3168_v38, %v2304_v53 }
 0xcc1   : > { %v2309_v56 = vsel %vm2308_vm8, %v3168_v38, %v2305_v55 }
 0xcc2   : > { %v2314_v58 = vsel %vm2311_vm9, %v2313_v57, %v2309_v56 }
 0xcc3   : > { %v2316_v59 = vmul.f32 %v2314_v58, %v2293_v45 }
 0xcc5   : > { %v2317_v60 = vpack.c.bf16 %v2316_v59, %v2316_v59 }
 0xcc7   : > { %2396 = vmatmul.bf16.vlgmr.msra.gmra.mxu0 %v2317_v60 }
 0xd44   : > { %v2397_v63 = vpop.f32.mrf.mxu0 }
 0xd45   : > { %v2398_v0 = vadd.f32 %v3118_v62, %v2397_v63 }
 0xd47   : > { %v2401_v1 = vadd.f32 %v2398_v0, %v3818_v7  ;;  %v3061_v7 = vld [vmem:[%s3936_s17] sm:$0xff] }
 0xd48   : > { %2460 = vmatpush.bf16.msra.mxu1 %v3061_v7 }
 0xd49   : > { %2402 = vst.msk [vmem:[#allocation2] sm:$0xff] %vm564_vm0, %v2401_v1 }
 0xd4c   : > { %v2399_v61 = vpop.f32.mrf.mxu0 }
 0xd50   : > { %v2405_v3 = vld [vmem:[%s2404_s0] sm:$0x1] }
 0xd51   : > { %v2409_v4 = vsel %vm2408_vm10, %v2405_v3, 0.0 }
 0xd52   : > { %2410 = vadd.xlane.f32.xlu0 %v2409_v4 }
 0xdc5   : > { %v2411_v5 = vpop.xlane.xlu0 %2410 }
 0xdc6   : > { %v2412_v6 = vmul.f32 %v2411_v5, %v3410_v10 }
 0xdc8   : > { %v2413_v17 = vsub.f32 %v2405_v3, %v2412_v6 }
 0xdca   : > { %v2414_v9 = vmul.f32 %v2413_v17, %v2413_v17 }
 0xdcc   : > { %v2415_v11 = vsel %vm2408_vm10, %v2414_v9, 0.0 }
 0xdcd   : > { %2416 = vadd.xlane.f32.xlu1 %v2415_v11 }
 0xe40   : > { %v2417_v13 = vpop.xlane.xlu1 %2416 }
 0xe41   : > { %v2418_v14 = vmul.f32 %v2417_v13, %v3410_v10  ;;  %v2407_v10 = vld [vmem:[%s3935_s16] sm:$0x1] }
 0xe43   : > { %v2419_v15 = vadd.f32 1e-05, %v2418_v14 }
 0xe45   : > { %3169 = vrsqrt.f32 %v2419_v15  ;;  %vm2426_vm12 = vweird.f32 %v2419_v15 }
 0xe4b   : > { %v3170_v39 = vpop.eup %3169 }
 0xe4c   : > { %v2421_v16 = vmul.f32 %v3170_v39, %v2419_v15  ;;  %vm2427_vm11 = vweird.f32 %v3170_v39 }
 0xe4d   : > { %vm2428_vm13 = vmor %vm2426_vm12, %vm2427_vm11 }
 0xe4e   : > { %v2422_v18 = vmul.f32 %v3170_v39, %v2421_v16 }
 0xe50   : > { %v2423_v8 = vmul.f32 0.5, %v2422_v18 }
 0xe52   : > { %v2424_v19 = vsub.f32 1.5, %v2423_v8 }
 0xe54   : > { %v2425_v20 = vmul.f32 %v3170_v39, %v2424_v19 }
 0xe56   : > { %v2429_v22 = vsel %vm2428_vm13, %v3170_v39, %v2425_v20 }
 0xe57   : > { %v2430_v23 = vmul.f32 %v2429_v22, %v2413_v17 }
 0xe59   : > { %v2431_v24 = vmul.f32 %v2430_v23, %v2406_v21 }
 0xe5b   : > { %v2432_v26 = vadd.f32 %v2431_v24, %v2407_v10 }
 0xe5d   : > { %v2433_v28 = vpack.c.bf16 %v2432_v26, %v2432_v26 }
 0xe5f   : > { %2990 = vmatmul.msk.bf16.vlgmr.msra.gmra.mxu1 %vm564_vm0, %v2433_v28 }
 0xedc   : > { %v2462_v29 = vpop.f32.mrf.mxu1 }
 0xedd   : > { %2467 = vst.msk [vmem:[%s547_s29] sm:$0x1] %vm2466_vm14, %v2462_v29 }
 0xede   : > { %3210 = shalt.err (!%p3207_p3)
}
 0xedf   : > { %3063 = dma.vmem_to_hbm [thread:$0]  (%p3388_p5), %s2480_s30, 16, %s2482_s21, %s2469_s22  }
 0xee4   : > { %v2464_v25 = vpop.f32.mrf.mxu1 }
 0xee5 PF: > { %s3962_s27 = sld [smem:[#allocation9_spill]]  ;;  %p3069_p4 = scmp.ge.s32.totalorder %s3247_s20, 2 }
 0xee7   : > { %p3066_p7 = pnand %p3069_p4, %p3392_p6 }
 0xee9   : > { %p3067_p8 = pneg %p3066_p7 }
 0xeeb   : > { %s2493_s29 = sand.u32 1, %s3962_s27  }
 0xeec   : > { %s2494_s3 = scalar_lea.sflag [#allocation6], %s2493_s29 }
 0xeed   : > { %3230 = dma.done.wait (%p3067_p8), %s2494_s3, 16  }
 0xeee   : > { %3232 = vsyncadd (%p3067_p8), %s2494_s3, 4294967280  ;;  %s3964_s20 = sld [smem:[#allocation11_spill]]  ;;  %s3967_s0 = smov %s3239_s19 }
 0xeef   : > { %s3965_s2 = sld [smem:[#allocation10_spill]] }
 0xef0   : > { %s3966_s1 = sld [smem:[#allocation12_spill]] }
 0xef4   : > { %p36_p9 = scmp.ge.s32.totalorder %s3964_s20, 4  }
 0xef5   : > { %s3968_s19 = smov %s3965_s2 }
 0xef6   :  { %38 = sbr.rel (!%p36_p9) target bundleno = 20 (0x14), region = 144 }
 0xefb   :  { %2499 = vsyncpa [#allocation6], 1 }
 0xefc   :  { %2501 = vsyncpa [#allocation6 + $0x1], 1 }

</bundles_post_ra>
